<compile_context>
chip_gen: v7x
topology: tpu7x:2x2x1
jax: 0.10.0
libtpu: 0.0.40
codegen_flags: <defaults>
</compile_context>

<pallas_src>
import jax
import jax.numpy as jnp
from jax.experimental import pallas as pl
from jax.experimental.pallas import tpu as pltpu


def _decoder_kernel(tf_ref,          # SMEM (T,)          int32  teacher-forcing flags
                    tgt_gates_ref,   # VMEM (T, Bp, 4H)   f32    (emb@Wih^T + b)[target]
                    h0_ref, c0_ref,  # VMEM (Bp, H)       f32    initial LSTM state
                    ew_ref,          # VMEM (Vp, 4H)      f32    emb@Wih^T + b (padded rows 0)
                    whh_wfc_ref,     # VMEM (H, 4H+Vp)    f32    [Whh^T | Wfc^T(padded)]
                    bfc_ref,         # VMEM (1, Vp)       f32    fc bias (-1e30 in pad cols)
                    pred_ref):       # out  (T, Bp, Vp)   f32
    T, Bp, Vp = pred_ref.shape
    H = h0_ref.shape[1]
    GH = 4 * H

    # predictions[0] stays zero (PyTorch leaves row 0 of the zeros tensor).
    pred_ref[0, :, :] = jnp.zeros((Bp, Vp), jnp.float32)

    # Hoisted once (JAX does not CSE broadcast/iota): lane-index grid, full
    # weight loads, pre-broadcast fc bias — reused by every unrolled step.
    col = jax.lax.broadcasted_iota(jnp.int32, (Bp, Vp), 1)
    ew = ew_ref[...]
    whh_wfc = whh_wfc_ref[...]
    bfc_b = jnp.broadcast_to(bfc_ref[...], (Bp, Vp))

    h = h0_ref[...]
    c = c0_ref[...]

    # T is small and static: fully unrolled time loop, no grid overhead.
    for t in range(1, T):
        # One fused matmul from h: [h @ W_hh^T | h @ W_fc^T]  -> (Bp, 4H+Vp).
        hz = jnp.dot(h, whh_wfc, preferred_element_type=jnp.float32)
        gate_h = hz[:, :GH]

        if t == 1:
            # Step 1 always consumes target[0] (precomputed teacher gates);
            # the wfc half of hz (would-be "logits of step 0") is discarded.
            in_gates = tgt_gates_ref[0]
        else:
            # Previous step's logits come out of the fused matmul.
            logits_prev = hz[:, GH:] + bfc_b
            pred_ref[t - 1, :, :] = logits_prev

            # First-occurrence argmax (torch semantics) -> one-hot -> fused
            # emb@W_ih gate contribution (bias already folded into ew).
            mx = jnp.max(logits_prev, axis=-1, keepdims=True)
            first = jnp.min(jnp.where(logits_prev == mx, col, Vp),
                            axis=-1, keepdims=True)
            amax_oh = (col == first).astype(jnp.float32)
            amax_gates = jnp.dot(amax_oh, ew, preferred_element_type=jnp.float32)

            use_target = tf_ref[t - 1] != 0
            in_gates = jnp.where(use_target, tgt_gates_ref[t - 1], amax_gates)

        # LSTM cell, PyTorch gate order (i, f, g, o); 4H = 128 on lanes.
        gates = in_gates + gate_h
        sg = jax.nn.sigmoid(gates)                 # one full-width EUP pass
        i_g = sg[:, 0 * H:1 * H]
        f_g = sg[:, 1 * H:2 * H]
        o_g = sg[:, 3 * H:4 * H]
        g_g = jnp.tanh(gates[:, 2 * H:3 * H])
        c = f_g * c + i_g * g_g
        h = o_g * jnp.tanh(c)

    # Final step's logits: one extra matmul after the loop (fused weight reused).
    hz_last = jnp.dot(h, whh_wfc, preferred_element_type=jnp.float32)
    pred_ref[T - 1, :, :] = hz_last[:, GH:] + bfc_b


def decoder_forward(target_ids, h0, c0, params, tf_flags):
    """target_ids: (T, B) int32. Returns (T, B, V) float32 predictions."""
    emb, wih, whh, bih, bhh, wfc, bfc = params
    T, B = target_ids.shape
    V, E = emb.shape
    H = h0.shape[1]
    GH = 4 * H

    Bp = ((B + 7) // 8) * 8          # sublane-align batch
    Vp = ((V + 127) // 128) * 128    # lane-align vocab / logits

    # --- Wrapper-side (one-time) fusions / padding / gathers -------------
    b = (bih + bhh).reshape(1, GH).astype(jnp.float32)

    # Fused emb @ W_ih^T with the gate bias folded in (one-hot rows sum to 1).
    ew = (emb.astype(jnp.float32) @ wih.T.astype(jnp.float32)) + b        # (V, GH)
    ew_p = jnp.zeros((Vp, GH), jnp.float32).at[:V].set(ew)

    # Teacher-forced input gate contributions, precomputed by gather.
    ids = target_ids.astype(jnp.int32)
    tgt_gates = ew[ids.reshape(-1)].reshape(T, B, GH)
    tgt_gates_p = jnp.zeros((T, Bp, GH), jnp.float32).at[:, :B].set(tgt_gates)

    # Fused [W_hh^T | W_fc^T] -> single (H, 4H+Vp) matmul from h per step.
    wfc_t_p = jnp.zeros((H, Vp), jnp.float32).at[:, :V].set(wfc.T.astype(jnp.float32))
    whh_wfc = jnp.concatenate([whh.T.astype(jnp.float32), wfc_t_p], axis=1)

    # Padded vocab bias = -1e30 so argmax feedback never selects pad columns.
    bfc_p = jnp.full((1, Vp), -1e30, jnp.float32).at[:, :V].set(bfc.astype(jnp.float32))

    h0_p = jnp.zeros((Bp, H), jnp.float32).at[:B].set(h0)
    c0_p = jnp.zeros((Bp, H), jnp.float32).at[:B].set(c0)

    smem = pl.BlockSpec(memory_space=pltpu.MemorySpace.SMEM)
    vmem = pl.BlockSpec(memory_space=pltpu.MemorySpace.VMEM)

    out = pl.pallas_call(
        _decoder_kernel,
        out_shape=jax.ShapeDtypeStruct((T, Bp, Vp), jnp.float32),
        in_specs=[smem, vmem, vmem, vmem, vmem, vmem, vmem],
        out_specs=vmem,
    )(tf_flags.astype(jnp.int32), tgt_gates_p, h0_p, c0_p, ew_p, whh_wfc, bfc_p)
    return out[:, :B, :V]


def decoder_reference(target, h0, c0, params, tf_flags):
    """Pure-JAX replica of the PyTorch Decoder.forward loop."""
    emb, wih, whh, bih, bhh, wfc, bfc = params
    T, B = target.shape
    V, H = emb.shape[0], h0.shape[1]
    preds = jnp.zeros((T, B, V), jnp.float32)
    h, c = h0, c0
    inp = target[0]
    for t in range(1, T):
        x = emb[inp]
        gates = x @ wih.T + h @ whh.T + bih[0] + bhh[0]
        i_g = jax.nn.sigmoid(gates[:, :H])
        f_g = jax.nn.sigmoid(gates[:, H:2 * H])
        g_g = jnp.tanh(gates[:, 2 * H:3 * H])
        o_g = jax.nn.sigmoid(gates[:, 3 * H:])
        c = f_g * c + i_g * g_g
        h = o_g * jnp.tanh(c)
        logits = h @ wfc.T + bfc[0]
        preds = preds.at[t].set(logits)
        inp = jnp.where(tf_flags[t] != 0, target[t], jnp.argmax(logits, axis=1))
    return preds


if __name__ == "__main__":
    T, B, V, E, H = 8, 4, 32, 16, 32

    key = jax.random.PRNGKey(0)
    keys = jax.random.split(key, 12)
    s = 0.1
    emb = jax.random.normal(keys[0], (V, E), jnp.float32) * s
    wih = jax.random.normal(keys[1], (4 * H, E), jnp.float32) * s
    whh = jax.random.normal(keys[2], (4 * H, H), jnp.float32) * s
    bih = jax.random.normal(keys[3], (1, 4 * H), jnp.float32) * s
    bhh = jax.random.normal(keys[4], (1, 4 * H), jnp.float32) * s
    wfc = jax.random.normal(keys[5], (V, H), jnp.float32) * s
    bfc = jax.random.normal(keys[6], (1, V), jnp.float32) * s
    params = (emb, wih, whh, bih, bhh, wfc, bfc)

    target = jax.random.randint(keys[7], (T, B), 0, V, dtype=jnp.int32)
    h0 = jax.random.normal(keys[8], (B, H), jnp.float32)
    c0 = jax.random.normal(keys[9], (B, H), jnp.float32)
    # Deterministic stand-in for python random.random() < teacher_forcing_ratio.
    tf_flags = jax.random.bernoulli(keys[10], 0.5, (T,)).astype(jnp.int32)

    preds = decoder_forward(target, h0, c0, params, tf_flags)
    preds = jax.block_until_ready(preds)

    ref = decoder_reference(target, h0, c0, params, tf_flags)
    assert preds.shape == (T, B, V)
    assert jnp.allclose(preds, ref, rtol=1e-5, atol=1e-5), "mismatch vs reference"

    print("KERNEL_OK")
</pallas_src>

<mosaic_0001>
module attributes {stable_mosaic.version = 11 : i64} {
  func.func @_decoder_kernel(%arg0: memref<8xi32, #tpu.memory_space<smem>>, %arg1: memref<8x8x128xf32, #tpu.memory_space<vmem>>, %arg2: memref<8x32xf32, #tpu.memory_space<vmem>>, %arg3: memref<8x32xf32, #tpu.memory_space<vmem>>, %arg4: memref<128x128xf32, #tpu.memory_space<vmem>>, %arg5: memref<32x256xf32, #tpu.memory_space<vmem>>, %arg6: memref<1x128xf32, #tpu.memory_space<vmem>>, %arg7: memref<8x8x128xf32, #tpu.memory_space<vmem>>) attributes {dimension_semantics = [], scalar_prefetch = 0 : i64, scratch_operands = 0 : i64, tpu.core_type = #tpu.core_type<tc>} {
    %cst = arith.constant 0.000000e+00 : f32
    %0 = vector.broadcast %cst : f32 to vector<8x128xf32>
    %c0 = arith.constant 0 : index
    %c0_0 = arith.constant 0 : index
    %c0_1 = arith.constant 0 : index
    %1 = vector.load %arg7[%c0, %c0_0, %c0_1] : memref<8x8x128xf32, #tpu.memory_space<vmem>>, vector<1x8x128xf32>
    %2 = vector.shape_cast %1 : vector<1x8x128xf32> to vector<8x128xf32>
    %3 = vector.shape_cast %0 : vector<8x128xf32> to vector<1x8x128xf32>
    tpu.vector_store %arg7[%c0, %c0_0, %c0_1], %3 {strides = array<i32>} : memref<8x8x128xf32, #tpu.memory_space<vmem>>, vector<1x8x128xf32>,
    %4 = tpu.iota {dimensions = array<i32: 1>} : vector<8x128xi32>
    %c0_2 = arith.constant 0 : index
    %c0_3 = arith.constant 0 : index
    %5 = vector.load %arg4[%c0_2, %c0_3] : memref<128x128xf32, #tpu.memory_space<vmem>>, vector<128x128xf32>
    %c0_4 = arith.constant 0 : index
    %c0_5 = arith.constant 0 : index
    %6 = vector.load %arg5[%c0_4, %c0_5] : memref<32x256xf32, #tpu.memory_space<vmem>>, vector<32x256xf32>
    %c0_6 = arith.constant 0 : index
    %c0_7 = arith.constant 0 : index
    %7 = vector.load %arg6[%c0_6, %c0_7] : memref<1x128xf32, #tpu.memory_space<vmem>>, vector<1x128xf32>
    %8 = vector.shape_cast %7 : vector<1x128xf32> to vector<1x128xf32>
    %9 = vector.broadcast %8 : vector<1x128xf32> to vector<8x128xf32>
    %c0_8 = arith.constant 0 : index
    %c0_9 = arith.constant 0 : index
    %10 = vector.load %arg2[%c0_8, %c0_9] : memref<8x32xf32, #tpu.memory_space<vmem>>, vector<8x32xf32>
    %c0_10 = arith.constant 0 : index
    %c0_11 = arith.constant 0 : index
    %11 = vector.load %arg3[%c0_10, %c0_11] : memref<8x32xf32, #tpu.memory_space<vmem>>, vector<8x32xf32>
    %cst_12 = arith.constant dense<0.000000e+00> : vector<8x256xf32>
    %12 = tpu.matmul %10, %6, %cst_12 {dimension_numbers = #tpu.dot_dimension_numbers<[1], [0], [0], [1], [0, 0, 1, 1], [], []>} : vector<8x32xf32>, vector<32x256xf32>, vector<8x256xf32> -> vector<8x256xf32>
    %13 = vector.extract_strided_slice %12 {offsets = [0, 0], sizes = [8, 128], strides = [1, 1]} : vector<8x256xf32> to vector<8x128xf32>
    %c0_13 = arith.constant 0 : index
    %c0_14 = arith.constant 0 : index
    %c0_15 = arith.constant 0 : index
    %14 = vector.load %arg1[%c0_13, %c0_14, %c0_15] : memref<8x8x128xf32, #tpu.memory_space<vmem>>, vector<1x8x128xf32>
    %15 = vector.shape_cast %14 : vector<1x8x128xf32> to vector<8x128xf32>
    %16 = arith.addf %15, %13 : vector<8x128xf32>
    %17 = arith.negf %16 : vector<8x128xf32>
    %18 = math.exp %17 : vector<8x128xf32>
    %cst_16 = arith.constant 1.000000e+00 : f32
    %19 = vector.broadcast %cst_16 : f32 to vector<8x128xf32>
    %20 = arith.addf %19, %18 : vector<8x128xf32>
    %21 = arith.divf %19, %20 : vector<8x128xf32>
    %22 = vector.extract_strided_slice %21 {offsets = [0, 0], sizes = [8, 32], strides = [1, 1]} : vector<8x128xf32> to vector<8x32xf32>
    %23 = vector.extract_strided_slice %21 {offsets = [0, 32], sizes = [8, 32], strides = [1, 1]} : vector<8x128xf32> to vector<8x32xf32>
    %24 = vector.extract_strided_slice %21 {offsets = [0, 96], sizes = [8, 32], strides = [1, 1]} : vector<8x128xf32> to vector<8x32xf32>
    %25 = vector.extract_strided_slice %16 {offsets = [0, 64], sizes = [8, 32], strides = [1, 1]} : vector<8x128xf32> to vector<8x32xf32>
    %26 = math.tanh %25 : vector<8x32xf32>
    %27 = arith.mulf %23, %11 : vector<8x32xf32>
    %28 = arith.mulf %22, %26 : vector<8x32xf32>
    %29 = arith.addf %27, %28 : vector<8x32xf32>
    %30 = math.tanh %29 : vector<8x32xf32>
    %31 = arith.mulf %24, %30 : vector<8x32xf32>
    %cst_17 = arith.constant dense<0.000000e+00> : vector<8x256xf32>
    %32 = tpu.matmul %31, %6, %cst_17 {dimension_numbers = #tpu.dot_dimension_numbers<[1], [0], [0], [1], [0, 0, 1, 1], [], []>} : vector<8x32xf32>, vector<32x256xf32>, vector<8x256xf32> -> vector<8x256xf32>
    %33 = vector.extract_strided_slice %32 {offsets = [0, 0], sizes = [8, 128], strides = [1, 1]} : vector<8x256xf32> to vector<8x128xf32>
    %34 = vector.extract_strided_slice %32 {offsets = [0, 128], sizes = [8, 128], strides = [1, 1]} : vector<8x256xf32> to vector<8x128xf32>
    %35 = arith.addf %34, %9 : vector<8x128xf32>
    %c1 = arith.constant 1 : index
    %c0_18 = arith.constant 0 : index
    %c0_19 = arith.constant 0 : index
    %36 = vector.load %arg7[%c1, %c0_18, %c0_19] : memref<8x8x128xf32, #tpu.memory_space<vmem>>, vector<1x8x128xf32>
    %37 = vector.shape_cast %36 : vector<1x8x128xf32> to vector<8x128xf32>
    %38 = vector.shape_cast %35 : vector<8x128xf32> to vector<1x8x128xf32>
    tpu.vector_store %arg7[%c1, %c0_18, %c0_19], %38 {strides = array<i32>} : memref<8x8x128xf32, #tpu.memory_space<vmem>>, vector<1x8x128xf32>,
    %cst_20 = arith.constant dense<0xFF800000> : vector<8xf32>
    %39 = vector.multi_reduction <maximumf>, %35, %cst_20 [1] : vector<8x128xf32> to vector<8xf32>
    %40 = vector.shape_cast %39 : vector<8xf32> to vector<8x1xf32>
    %41 = vector.broadcast %40 : vector<8x1xf32> to vector<8x128xf32>
    %42 = arith.cmpf oeq, %35, %41 : vector<8x128xf32>
    %c128_i32 = arith.constant 128 : i32
    %43 = vector.broadcast %c128_i32 : i32 to vector<8x128xi32>
    %44 = arith.select %42, %4, %43 : vector<8x128xi1>, vector<8x128xi32>
    %cst_21 = arith.constant dense<2147483647> : vector<8xi32>
    %45 = vector.multi_reduction <minsi>, %44, %cst_21 [1] : vector<8x128xi32> to vector<8xi32>
    %46 = vector.shape_cast %45 : vector<8xi32> to vector<8x1xi32>
    %47 = vector.broadcast %46 : vector<8x1xi32> to vector<8x128xi32>
    %48 = arith.cmpi eq, %4, %47 : vector<8x128xi32>
    %49 = arith.extui %48 : vector<8x128xi1> to vector<8x128xi32>
    %50 = arith.sitofp %49 : vector<8x128xi32> to vector<8x128xf32>
    %cst_22 = arith.constant dense<0.000000e+00> : vector<8x128xf32>
    %51 = tpu.matmul %50, %5, %cst_22 {dimension_numbers = #tpu.dot_dimension_numbers<[1], [0], [0], [1], [0, 0, 1, 1], [], []>} : vector<8x128xf32>, vector<128x128xf32>, vector<8x128xf32> -> vector<8x128xf32>
    %c1_23 = arith.constant 1 : index
    %52 = memref.load %arg0[%c1_23] : memref<8xi32, #tpu.memory_space<smem>>
    %c0_i32 = arith.constant 0 : i32
    %53 = arith.cmpi ne, %52, %c0_i32 : i32
    %c1_24 = arith.constant 1 : index
    %c0_25 = arith.constant 0 : index
    %c0_26 = arith.constant 0 : index
    %54 = vector.load %arg1[%c1_24, %c0_25, %c0_26] : memref<8x8x128xf32, #tpu.memory_space<vmem>>, vector<1x8x128xf32>
    %55 = vector.shape_cast %54 : vector<1x8x128xf32> to vector<8x128xf32>
    %56 = arith.select %53, %55, %51 : vector<8x128xf32>
    %57 = arith.addf %56, %33 : vector<8x128xf32>
    %58 = arith.negf %57 : vector<8x128xf32>
    %59 = math.exp %58 : vector<8x128xf32>
    %cst_27 = arith.constant 1.000000e+00 : f32
    %60 = vector.broadcast %cst_27 : f32 to vector<8x128xf32>
    %61 = arith.addf %60, %59 : vector<8x128xf32>
    %62 = arith.divf %60, %61 : vector<8x128xf32>
    %63 = vector.extract_strided_slice %62 {offsets = [0, 0], sizes = [8, 32], strides = [1, 1]} : vector<8x128xf32> to vector<8x32xf32>
    %64 = vector.extract_strided_slice %62 {offsets = [0, 32], sizes = [8, 32], strides = [1, 1]} : vector<8x128xf32> to vector<8x32xf32>
    %65 = vector.extract_strided_slice %62 {offsets = [0, 96], sizes = [8, 32], strides = [1, 1]} : vector<8x128xf32> to vector<8x32xf32>
    %66 = vector.extract_strided_slice %57 {offsets = [0, 64], sizes = [8, 32], strides = [1, 1]} : vector<8x128xf32> to vector<8x32xf32>
    %67 = math.tanh %66 : vector<8x32xf32>
    %68 = arith.mulf %64, %29 : vector<8x32xf32>
    %69 = arith.mulf %63, %67 : vector<8x32xf32>
    %70 = arith.addf %68, %69 : vector<8x32xf32>
    %71 = math.tanh %70 : vector<8x32xf32>
    %72 = arith.mulf %65, %71 : vector<8x32xf32>
    %cst_28 = arith.constant dense<0.000000e+00> : vector<8x256xf32>
    %73 = tpu.matmul %72, %6, %cst_28 {dimension_numbers = #tpu.dot_dimension_numbers<[1], [0], [0], [1], [0, 0, 1, 1], [], []>} : vector<8x32xf32>, vector<32x256xf32>, vector<8x256xf32> -> vector<8x256xf32>
    %74 = vector.extract_strided_slice %73 {offsets = [0, 0], sizes = [8, 128], strides = [1, 1]} : vector<8x256xf32> to vector<8x128xf32>
    %75 = vector.extract_strided_slice %73 {offsets = [0, 128], sizes = [8, 128], strides = [1, 1]} : vector<8x256xf32> to vector<8x128xf32>
    %76 = arith.addf %75, %9 : vector<8x128xf32>
    %c2 = arith.constant 2 : index
    %c0_29 = arith.constant 0 : index
    %c0_30 = arith.constant 0 : index
    %77 = vector.load %arg7[%c2, %c0_29, %c0_30] : memref<8x8x128xf32, #tpu.memory_space<vmem>>, vector<1x8x128xf32>
    %78 = vector.shape_cast %77 : vector<1x8x128xf32> to vector<8x128xf32>
    %79 = vector.shape_cast %76 : vector<8x128xf32> to vector<1x8x128xf32>
    tpu.vector_store %arg7[%c2, %c0_29, %c0_30], %79 {strides = array<i32>} : memref<8x8x128xf32, #tpu.memory_space<vmem>>, vector<1x8x128xf32>,
    %cst_31 = arith.constant dense<0xFF800000> : vector<8xf32>
    %80 = vector.multi_reduction <maximumf>, %76, %cst_31 [1] : vector<8x128xf32> to vector<8xf32>
    %81 = vector.shape_cast %80 : vector<8xf32> to vector<8x1xf32>
    %82 = vector.broadcast %81 : vector<8x1xf32> to vector<8x128xf32>
    %83 = arith.cmpf oeq, %76, %82 : vector<8x128xf32>
    %c128_i32_32 = arith.constant 128 : i32
    %84 = vector.broadcast %c128_i32_32 : i32 to vector<8x128xi32>
    %85 = arith.select %83, %4, %84 : vector<8x128xi1>, vector<8x128xi32>
    %cst_33 = arith.constant dense<2147483647> : vector<8xi32>
    %86 = vector.multi_reduction <minsi>, %85, %cst_33 [1] : vector<8x128xi32> to vector<8xi32>
    %87 = vector.shape_cast %86 : vector<8xi32> to vector<8x1xi32>
    %88 = vector.broadcast %87 : vector<8x1xi32> to vector<8x128xi32>
    %89 = arith.cmpi eq, %4, %88 : vector<8x128xi32>
    %90 = arith.extui %89 : vector<8x128xi1> to vector<8x128xi32>
    %91 = arith.sitofp %90 : vector<8x128xi32> to vector<8x128xf32>
    %cst_34 = arith.constant dense<0.000000e+00> : vector<8x128xf32>
    %92 = tpu.matmul %91, %5, %cst_34 {dimension_numbers = #tpu.dot_dimension_numbers<[1], [0], [0], [1], [0, 0, 1, 1], [], []>} : vector<8x128xf32>, vector<128x128xf32>, vector<8x128xf32> -> vector<8x128xf32>
    %c2_35 = arith.constant 2 : index
    %93 = memref.load %arg0[%c2_35] : memref<8xi32, #tpu.memory_space<smem>>
    %c0_i32_36 = arith.constant 0 : i32
    %94 = arith.cmpi ne, %93, %c0_i32_36 : i32
    %c2_37 = arith.constant 2 : index
    %c0_38 = arith.constant 0 : index
    %c0_39 = arith.constant 0 : index
    %95 = vector.load %arg1[%c2_37, %c0_38, %c0_39] : memref<8x8x128xf32, #tpu.memory_space<vmem>>, vector<1x8x128xf32>
    %96 = vector.shape_cast %95 : vector<1x8x128xf32> to vector<8x128xf32>
    %97 = arith.select %94, %96, %92 : vector<8x128xf32>
    %98 = arith.addf %97, %74 : vector<8x128xf32>
    %99 = arith.negf %98 : vector<8x128xf32>
    %100 = math.exp %99 : vector<8x128xf32>
    %cst_40 = arith.constant 1.000000e+00 : f32
    %101 = vector.broadcast %cst_40 : f32 to vector<8x128xf32>
    %102 = arith.addf %101, %100 : vector<8x128xf32>
    %103 = arith.divf %101, %102 : vector<8x128xf32>
    %104 = vector.extract_strided_slice %103 {offsets = [0, 0], sizes = [8, 32], strides = [1, 1]} : vector<8x128xf32> to vector<8x32xf32>
    %105 = vector.extract_strided_slice %103 {offsets = [0, 32], sizes = [8, 32], strides = [1, 1]} : vector<8x128xf32> to vector<8x32xf32>
    %106 = vector.extract_strided_slice %103 {offsets = [0, 96], sizes = [8, 32], strides = [1, 1]} : vector<8x128xf32> to vector<8x32xf32>
    %107 = vector.extract_strided_slice %98 {offsets = [0, 64], sizes = [8, 32], strides = [1, 1]} : vector<8x128xf32> to vector<8x32xf32>
    %108 = math.tanh %107 : vector<8x32xf32>
    %109 = arith.mulf %105, %70 : vector<8x32xf32>
    %110 = arith.mulf %104, %108 : vector<8x32xf32>
    %111 = arith.addf %109, %110 : vector<8x32xf32>
    %112 = math.tanh %111 : vector<8x32xf32>
    %113 = arith.mulf %106, %112 : vector<8x32xf32>
    %cst_41 = arith.constant dense<0.000000e+00> : vector<8x256xf32>
    %114 = tpu.matmul %113, %6, %cst_41 {dimension_numbers = #tpu.dot_dimension_numbers<[1], [0], [0], [1], [0, 0, 1, 1], [], []>} : vector<8x32xf32>, vector<32x256xf32>, vector<8x256xf32> -> vector<8x256xf32>
    %115 = vector.extract_strided_slice %114 {offsets = [0, 0], sizes = [8, 128], strides = [1, 1]} : vector<8x256xf32> to vector<8x128xf32>
    %116 = vector.extract_strided_slice %114 {offsets = [0, 128], sizes = [8, 128], strides = [1, 1]} : vector<8x256xf32> to vector<8x128xf32>
    %117 = arith.addf %116, %9 : vector<8x128xf32>
    %c3 = arith.constant 3 : index
    %c0_42 = arith.constant 0 : index
    %c0_43 = arith.constant 0 : index
    %118 = vector.load %arg7[%c3, %c0_42, %c0_43] : memref<8x8x128xf32, #tpu.memory_space<vmem>>, vector<1x8x128xf32>
    %119 = vector.shape_cast %118 : vector<1x8x128xf32> to vector<8x128xf32>
    %120 = vector.shape_cast %117 : vector<8x128xf32> to vector<1x8x128xf32>
    tpu.vector_store %arg7[%c3, %c0_42, %c0_43], %120 {strides = array<i32>} : memref<8x8x128xf32, #tpu.memory_space<vmem>>, vector<1x8x128xf32>,
    %cst_44 = arith.constant dense<0xFF800000> : vector<8xf32>
    %121 = vector.multi_reduction <maximumf>, %117, %cst_44 [1] : vector<8x128xf32> to vector<8xf32>
    %122 = vector.shape_cast %121 : vector<8xf32> to vector<8x1xf32>
    %123 = vector.broadcast %122 : vector<8x1xf32> to vector<8x128xf32>
    %124 = arith.cmpf oeq, %117, %123 : vector<8x128xf32>
    %c128_i32_45 = arith.constant 128 : i32
    %125 = vector.broadcast %c128_i32_45 : i32 to vector<8x128xi32>
    %126 = arith.select %124, %4, %125 : vector<8x128xi1>, vector<8x128xi32>
    %cst_46 = arith.constant dense<2147483647> : vector<8xi32>
    %127 = vector.multi_reduction <minsi>, %126, %cst_46 [1] : vector<8x128xi32> to vector<8xi32>
    %128 = vector.shape_cast %127 : vector<8xi32> to vector<8x1xi32>
    %129 = vector.broadcast %128 : vector<8x1xi32> to vector<8x128xi32>
    %130 = arith.cmpi eq, %4, %129 : vector<8x128xi32>
    %131 = arith.extui %130 : vector<8x128xi1> to vector<8x128xi32>
    %132 = arith.sitofp %131 : vector<8x128xi32> to vector<8x128xf32>
    %cst_47 = arith.constant dense<0.000000e+00> : vector<8x128xf32>
    %133 = tpu.matmul %132, %5, %cst_47 {dimension_numbers = #tpu.dot_dimension_numbers<[1], [0], [0], [1], [0, 0, 1, 1], [], []>} : vector<8x128xf32>, vector<128x128xf32>, vector<8x128xf32> -> vector<8x128xf32>
    %c3_48 = arith.constant 3 : index
    %134 = memref.load %arg0[%c3_48] : memref<8xi32, #tpu.memory_space<smem>>
    %c0_i32_49 = arith.constant 0 : i32
    %135 = arith.cmpi ne, %134, %c0_i32_49 : i32
    %c3_50 = arith.constant 3 : index
    %c0_51 = arith.constant 0 : index
    %c0_52 = arith.constant 0 : index
    %136 = vector.load %arg1[%c3_50, %c0_51, %c0_52] : memref<8x8x128xf32, #tpu.memory_space<vmem>>, vector<1x8x128xf32>
    %137 = vector.shape_cast %136 : vector<1x8x128xf32> to vector<8x128xf32>
    %138 = arith.select %135, %137, %133 : vector<8x128xf32>
    %139 = arith.addf %138, %115 : vector<8x128xf32>
    %140 = arith.negf %139 : vector<8x128xf32>
    %141 = math.exp %140 : vector<8x128xf32>
    %cst_53 = arith.constant 1.000000e+00 : f32
    %142 = vector.broadcast %cst_53 : f32 to vector<8x128xf32>
    %143 = arith.addf %142, %141 : vector<8x128xf32>
    %144 = arith.divf %142, %143 : vector<8x128xf32>
    %145 = vector.extract_strided_slice %144 {offsets = [0, 0], sizes = [8, 32], strides = [1, 1]} : vector<8x128xf32> to vector<8x32xf32>
    %146 = vector.extract_strided_slice %144 {offsets = [0, 32], sizes = [8, 32], strides = [1, 1]} : vector<8x128xf32> to vector<8x32xf32>
    %147 = vector.extract_strided_slice %144 {offsets = [0, 96], sizes = [8, 32], strides = [1, 1]} : vector<8x128xf32> to vector<8x32xf32>
    %148 = vector.extract_strided_slice %139 {offsets = [0, 64], sizes = [8, 32], strides = [1, 1]} : vector<8x128xf32> to vector<8x32xf32>
    %149 = math.tanh %148 : vector<8x32xf32>
    %150 = arith.mulf %146, %111 : vector<8x32xf32>
    %151 = arith.mulf %145, %149 : vector<8x32xf32>
    %152 = arith.addf %150, %151 : vector<8x32xf32>
    %153 = math.tanh %152 : vector<8x32xf32>
    %154 = arith.mulf %147, %153 : vector<8x32xf32>
    %cst_54 = arith.constant dense<0.000000e+00> : vector<8x256xf32>
    %155 = tpu.matmul %154, %6, %cst_54 {dimension_numbers = #tpu.dot_dimension_numbers<[1], [0], [0], [1], [0, 0, 1, 1], [], []>} : vector<8x32xf32>, vector<32x256xf32>, vector<8x256xf32> -> vector<8x256xf32>
    %156 = vector.extract_strided_slice %155 {offsets = [0, 0], sizes = [8, 128], strides = [1, 1]} : vector<8x256xf32> to vector<8x128xf32>
    %157 = vector.extract_strided_slice %155 {offsets = [0, 128], sizes = [8, 128], strides = [1, 1]} : vector<8x256xf32> to vector<8x128xf32>
    %158 = arith.addf %157, %9 : vector<8x128xf32>
    %c4 = arith.constant 4 : index
    %c0_55 = arith.constant 0 : index
    %c0_56 = arith.constant 0 : index
    %159 = vector.load %arg7[%c4, %c0_55, %c0_56] : memref<8x8x128xf32, #tpu.memory_space<vmem>>, vector<1x8x128xf32>
    %160 = vector.shape_cast %159 : vector<1x8x128xf32> to vector<8x128xf32>
    %161 = vector.shape_cast %158 : vector<8x128xf32> to vector<1x8x128xf32>
    tpu.vector_store %arg7[%c4, %c0_55, %c0_56], %161 {strides = array<i32>} : memref<8x8x128xf32, #tpu.memory_space<vmem>>, vector<1x8x128xf32>,
    %cst_57 = arith.constant dense<0xFF800000> : vector<8xf32>
    %162 = vector.multi_reduction <maximumf>, %158, %cst_57 [1] : vector<8x128xf32> to vector<8xf32>
    %163 = vector.shape_cast %162 : vector<8xf32> to vector<8x1xf32>
    %164 = vector.broadcast %163 : vector<8x1xf32> to vector<8x128xf32>
    %165 = arith.cmpf oeq, %158, %164 : vector<8x128xf32>
    %c128_i32_58 = arith.constant 128 : i32
    %166 = vector.broadcast %c128_i32_58 : i32 to vector<8x128xi32>
    %167 = arith.select %165, %4, %166 : vector<8x128xi1>, vector<8x128xi32>
    %cst_59 = arith.constant dense<2147483647> : vector<8xi32>
    %168 = vector.multi_reduction <minsi>, %167, %cst_59 [1] : vector<8x128xi32> to vector<8xi32>
    %169 = vector.shape_cast %168 : vector<8xi32> to vector<8x1xi32>
    %170 = vector.broadcast %169 : vector<8x1xi32> to vector<8x128xi32>
    %171 = arith.cmpi eq, %4, %170 : vector<8x128xi32>
    %172 = arith.extui %171 : vector<8x128xi1> to vector<8x128xi32>
    %173 = arith.sitofp %172 : vector<8x128xi32> to vector<8x128xf32>
    %cst_60 = arith.constant dense<0.000000e+00> : vector<8x128xf32>
    %174 = tpu.matmul %173, %5, %cst_60 {dimension_numbers = #tpu.dot_dimension_numbers<[1], [0], [0], [1], [0, 0, 1, 1], [], []>} : vector<8x128xf32>, vector<128x128xf32>, vector<8x128xf32> -> vector<8x128xf32>
    %c4_61 = arith.constant 4 : index
    %175 = memref.load %arg0[%c4_61] : memref<8xi32, #tpu.memory_space<smem>>
    %c0_i32_62 = arith.constant 0 : i32
    %176 = arith.cmpi ne, %175, %c0_i32_62 : i32
    %c4_63 = arith.constant 4 : index
    %c0_64 = arith.constant 0 : index
    %c0_65 = arith.constant 0 : index
    %177 = vector.load %arg1[%c4_63, %c0_64, %c0_65] : memref<8x8x128xf32, #tpu.memory_space<vmem>>, vector<1x8x128xf32>
    %178 = vector.shape_cast %177 : vector<1x8x128xf32> to vector<8x128xf32>
    %179 = arith.select %176, %178, %174 : vector<8x128xf32>
    %180 = arith.addf %179, %156 : vector<8x128xf32>
    %181 = arith.negf %180 : vector<8x128xf32>
    %182 = math.exp %181 : vector<8x128xf32>
    %cst_66 = arith.constant 1.000000e+00 : f32
    %183 = vector.broadcast %cst_66 : f32 to vector<8x128xf32>
    %184 = arith.addf %183, %182 : vector<8x128xf32>
    %185 = arith.divf %183, %184 : vector<8x128xf32>
    %186 = vector.extract_strided_slice %185 {offsets = [0, 0], sizes = [8, 32], strides = [1, 1]} : vector<8x128xf32> to vector<8x32xf32>
    %187 = vector.extract_strided_slice %185 {offsets = [0, 32], sizes = [8, 32], strides = [1, 1]} : vector<8x128xf32> to vector<8x32xf32>
    %188 = vector.extract_strided_slice %185 {offsets = [0, 96], sizes = [8, 32], strides = [1, 1]} : vector<8x128xf32> to vector<8x32xf32>
    %189 = vector.extract_strided_slice %180 {offsets = [0, 64], sizes = [8, 32], strides = [1, 1]} : vector<8x128xf32> to vector<8x32xf32>
    %190 = math.tanh %189 : vector<8x32xf32>
    %191 = arith.mulf %187, %152 : vector<8x32xf32>
    %192 = arith.mulf %186, %190 : vector<8x32xf32>
    %193 = arith.addf %191, %192 : vector<8x32xf32>
    %194 = math.tanh %193 : vector<8x32xf32>
    %195 = arith.mulf %188, %194 : vector<8x32xf32>
    %cst_67 = arith.constant dense<0.000000e+00> : vector<8x256xf32>
    %196 = tpu.matmul %195, %6, %cst_67 {dimension_numbers = #tpu.dot_dimension_numbers<[1], [0], [0], [1], [0, 0, 1, 1], [], []>} : vector<8x32xf32>, vector<32x256xf32>, vector<8x256xf32> -> vector<8x256xf32>
    %197 = vector.extract_strided_slice %196 {offsets = [0, 0], sizes = [8, 128], strides = [1, 1]} : vector<8x256xf32> to vector<8x128xf32>
    %198 = vector.extract_strided_slice %196 {offsets = [0, 128], sizes = [8, 128], strides = [1, 1]} : vector<8x256xf32> to vector<8x128xf32>
    %199 = arith.addf %198, %9 : vector<8x128xf32>
    %c5 = arith.constant 5 : index
    %c0_68 = arith.constant 0 : index
    %c0_69 = arith.constant 0 : index
    %200 = vector.load %arg7[%c5, %c0_68, %c0_69] : memref<8x8x128xf32, #tpu.memory_space<vmem>>, vector<1x8x128xf32>
    %201 = vector.shape_cast %200 : vector<1x8x128xf32> to vector<8x128xf32>
    %202 = vector.shape_cast %199 : vector<8x128xf32> to vector<1x8x128xf32>
    tpu.vector_store %arg7[%c5, %c0_68, %c0_69], %202 {strides = array<i32>} : memref<8x8x128xf32, #tpu.memory_space<vmem>>, vector<1x8x128xf32>,
    %cst_70 = arith.constant dense<0xFF800000> : vector<8xf32>
    %203 = vector.multi_reduction <maximumf>, %199, %cst_70 [1] : vector<8x128xf32> to vector<8xf32>
    %204 = vector.shape_cast %203 : vector<8xf32> to vector<8x1xf32>
    %205 = vector.broadcast %204 : vector<8x1xf32> to vector<8x128xf32>
    %206 = arith.cmpf oeq, %199, %205 : vector<8x128xf32>
    %c128_i32_71 = arith.constant 128 : i32
    %207 = vector.broadcast %c128_i32_71 : i32 to vector<8x128xi32>
    %208 = arith.select %206, %4, %207 : vector<8x128xi1>, vector<8x128xi32>
    %cst_72 = arith.constant dense<2147483647> : vector<8xi32>
    %209 = vector.multi_reduction <minsi>, %208, %cst_72 [1] : vector<8x128xi32> to vector<8xi32>
    %210 = vector.shape_cast %209 : vector<8xi32> to vector<8x1xi32>
    %211 = vector.broadcast %210 : vector<8x1xi32> to vector<8x128xi32>
    %212 = arith.cmpi eq, %4, %211 : vector<8x128xi32>
    %213 = arith.extui %212 : vector<8x128xi1> to vector<8x128xi32>
    %214 = arith.sitofp %213 : vector<8x128xi32> to vector<8x128xf32>
    %cst_73 = arith.constant dense<0.000000e+00> : vector<8x128xf32>
    %215 = tpu.matmul %214, %5, %cst_73 {dimension_numbers = #tpu.dot_dimension_numbers<[1], [0], [0], [1], [0, 0, 1, 1], [], []>} : vector<8x128xf32>, vector<128x128xf32>, vector<8x128xf32> -> vector<8x128xf32>
    %c5_74 = arith.constant 5 : index
    %216 = memref.load %arg0[%c5_74] : memref<8xi32, #tpu.memory_space<smem>>
    %c0_i32_75 = arith.constant 0 : i32
    %217 = arith.cmpi ne, %216, %c0_i32_75 : i32
    %c5_76 = arith.constant 5 : index
    %c0_77 = arith.constant 0 : index
    %c0_78 = arith.constant 0 : index
    %218 = vector.load %arg1[%c5_76, %c0_77, %c0_78] : memref<8x8x128xf32, #tpu.memory_space<vmem>>, vector<1x8x128xf32>
    %219 = vector.shape_cast %218 : vector<1x8x128xf32> to vector<8x128xf32>
    %220 = arith.select %217, %219, %215 : vector<8x128xf32>
    %221 = arith.addf %220, %197 : vector<8x128xf32>
    %222 = arith.negf %221 : vector<8x128xf32>
    %223 = math.exp %222 : vector<8x128xf32>
    %cst_79 = arith.constant 1.000000e+00 : f32
    %224 = vector.broadcast %cst_79 : f32 to vector<8x128xf32>
    %225 = arith.addf %224, %223 : vector<8x128xf32>
    %226 = arith.divf %224, %225 : vector<8x128xf32>
    %227 = vector.extract_strided_slice %226 {offsets = [0, 0], sizes = [8, 32], strides = [1, 1]} : vector<8x128xf32> to vector<8x32xf32>
    %228 = vector.extract_strided_slice %226 {offsets = [0, 32], sizes = [8, 32], strides = [1, 1]} : vector<8x128xf32> to vector<8x32xf32>
    %229 = vector.extract_strided_slice %226 {offsets = [0, 96], sizes = [8, 32], strides = [1, 1]} : vector<8x128xf32> to vector<8x32xf32>
    %230 = vector.extract_strided_slice %221 {offsets = [0, 64], sizes = [8, 32], strides = [1, 1]} : vector<8x128xf32> to vector<8x32xf32>
    %231 = math.tanh %230 : vector<8x32xf32>
    %232 = arith.mulf %228, %193 : vector<8x32xf32>
    %233 = arith.mulf %227, %231 : vector<8x32xf32>
    %234 = arith.addf %232, %233 : vector<8x32xf32>
    %235 = math.tanh %234 : vector<8x32xf32>
    %236 = arith.mulf %229, %235 : vector<8x32xf32>
    %cst_80 = arith.constant dense<0.000000e+00> : vector<8x256xf32>
    %237 = tpu.matmul %236, %6, %cst_80 {dimension_numbers = #tpu.dot_dimension_numbers<[1], [0], [0], [1], [0, 0, 1, 1], [], []>} : vector<8x32xf32>, vector<32x256xf32>, vector<8x256xf32> -> vector<8x256xf32>
    %238 = vector.extract_strided_slice %237 {offsets = [0, 0], sizes = [8, 128], strides = [1, 1]} : vector<8x256xf32> to vector<8x128xf32>
    %239 = vector.extract_strided_slice %237 {offsets = [0, 128], sizes = [8, 128], strides = [1, 1]} : vector<8x256xf32> to vector<8x128xf32>
    %240 = arith.addf %239, %9 : vector<8x128xf32>
    %c6 = arith.constant 6 : index
    %c0_81 = arith.constant 0 : index
    %c0_82 = arith.constant 0 : index
    %241 = vector.load %arg7[%c6, %c0_81, %c0_82] : memref<8x8x128xf32, #tpu.memory_space<vmem>>, vector<1x8x128xf32>
    %242 = vector.shape_cast %241 : vector<1x8x128xf32> to vector<8x128xf32>
    %243 = vector.shape_cast %240 : vector<8x128xf32> to vector<1x8x128xf32>
    tpu.vector_store %arg7[%c6, %c0_81, %c0_82], %243 {strides = array<i32>} : memref<8x8x128xf32, #tpu.memory_space<vmem>>, vector<1x8x128xf32>,
    %cst_83 = arith.constant dense<0xFF800000> : vector<8xf32>
    %244 = vector.multi_reduction <maximumf>, %240, %cst_83 [1] : vector<8x128xf32> to vector<8xf32>
    %245 = vector.shape_cast %244 : vector<8xf32> to vector<8x1xf32>
    %246 = vector.broadcast %245 : vector<8x1xf32> to vector<8x128xf32>
    %247 = arith.cmpf oeq, %240, %246 : vector<8x128xf32>
    %c128_i32_84 = arith.constant 128 : i32
    %248 = vector.broadcast %c128_i32_84 : i32 to vector<8x128xi32>
    %249 = arith.select %247, %4, %248 : vector<8x128xi1>, vector<8x128xi32>
    %cst_85 = arith.constant dense<2147483647> : vector<8xi32>
    %250 = vector.multi_reduction <minsi>, %249, %cst_85 [1] : vector<8x128xi32> to vector<8xi32>
    %251 = vector.shape_cast %250 : vector<8xi32> to vector<8x1xi32>
    %252 = vector.broadcast %251 : vector<8x1xi32> to vector<8x128xi32>
    %253 = arith.cmpi eq, %4, %252 : vector<8x128xi32>
    %254 = arith.extui %253 : vector<8x128xi1> to vector<8x128xi32>
    %255 = arith.sitofp %254 : vector<8x128xi32> to vector<8x128xf32>
    %cst_86 = arith.constant dense<0.000000e+00> : vector<8x128xf32>
    %256 = tpu.matmul %255, %5, %cst_86 {dimension_numbers = #tpu.dot_dimension_numbers<[1], [0], [0], [1], [0, 0, 1, 1], [], []>} : vector<8x128xf32>, vector<128x128xf32>, vector<8x128xf32> -> vector<8x128xf32>
    %c6_87 = arith.constant 6 : index
    %257 = memref.load %arg0[%c6_87] : memref<8xi32, #tpu.memory_space<smem>>
    %c0_i32_88 = arith.constant 0 : i32
    %258 = arith.cmpi ne, %257, %c0_i32_88 : i32
    %c6_89 = arith.constant 6 : index
    %c0_90 = arith.constant 0 : index
    %c0_91 = arith.constant 0 : index
    %259 = vector.load %arg1[%c6_89, %c0_90, %c0_91] : memref<8x8x128xf32, #tpu.memory_space<vmem>>, vector<1x8x128xf32>
    %260 = vector.shape_cast %259 : vector<1x8x128xf32> to vector<8x128xf32>
    %261 = arith.select %258, %260, %256 : vector<8x128xf32>
    %262 = arith.addf %261, %238 : vector<8x128xf32>
    %263 = arith.negf %262 : vector<8x128xf32>
    %264 = math.exp %263 : vector<8x128xf32>
    %cst_92 = arith.constant 1.000000e+00 : f32
    %265 = vector.broadcast %cst_92 : f32 to vector<8x128xf32>
    %266 = arith.addf %265, %264 : vector<8x128xf32>
    %267 = arith.divf %265, %266 : vector<8x128xf32>
    %268 = vector.extract_strided_slice %267 {offsets = [0, 0], sizes = [8, 32], strides = [1, 1]} : vector<8x128xf32> to vector<8x32xf32>
    %269 = vector.extract_strided_slice %267 {offsets = [0, 32], sizes = [8, 32], strides = [1, 1]} : vector<8x128xf32> to vector<8x32xf32>
    %270 = vector.extract_strided_slice %267 {offsets = [0, 96], sizes = [8, 32], strides = [1, 1]} : vector<8x128xf32> to vector<8x32xf32>
    %271 = vector.extract_strided_slice %262 {offsets = [0, 64], sizes = [8, 32], strides = [1, 1]} : vector<8x128xf32> to vector<8x32xf32>
    %272 = math.tanh %271 : vector<8x32xf32>
    %273 = arith.mulf %269, %234 : vector<8x32xf32>
    %274 = arith.mulf %268, %272 : vector<8x32xf32>
    %275 = arith.addf %273, %274 : vector<8x32xf32>
    %276 = math.tanh %275 : vector<8x32xf32>
    %277 = arith.mulf %270, %276 : vector<8x32xf32>
    %cst_93 = arith.constant dense<0.000000e+00> : vector<8x256xf32>
    %278 = tpu.matmul %277, %6, %cst_93 {dimension_numbers = #tpu.dot_dimension_numbers<[1], [0], [0], [1], [0, 0, 1, 1], [], []>} : vector<8x32xf32>, vector<32x256xf32>, vector<8x256xf32> -> vector<8x256xf32>
    %279 = vector.extract_strided_slice %278 {offsets = [0, 128], sizes = [8, 128], strides = [1, 1]} : vector<8x256xf32> to vector<8x128xf32>
    %280 = arith.addf %279, %9 : vector<8x128xf32>
    %c7 = arith.constant 7 : index
    %c0_94 = arith.constant 0 : index
    %c0_95 = arith.constant 0 : index
    %281 = vector.load %arg7[%c7, %c0_94, %c0_95] : memref<8x8x128xf32, #tpu.memory_space<vmem>>, vector<1x8x128xf32>
    %282 = vector.shape_cast %281 : vector<1x8x128xf32> to vector<8x128xf32>
    %283 = vector.shape_cast %280 : vector<8x128xf32> to vector<1x8x128xf32>
    tpu.vector_store %arg7[%c7, %c0_94, %c0_95], %283 {strides = array<i32>} : memref<8x8x128xf32, #tpu.memory_space<vmem>>, vector<1x8x128xf32>,
    return
  }
}

</mosaic_0001>

<bundles_post_ra>
// kernel: tpu_custom_call.1
= control target key start
LH: loop header
LB: loop body
LE: loop exit
PB: predicated region body
PF: predicated region fallthrough
CT: control target
= control target key end

     0   :  { %12 = vsyncpa [#allocation5], 0  ;;  %s2712_s0 = inlined_call_operand.hbm [shape: s32[8], index: 0, kind: input, shape index: {}]   ;;  %s2713_s1 = inlined_call_operand.hbm [shape: f32[8,8,128], index: 1, kind: input, shape index: {}]   ;;  %s2714_s2 = inlined_call_operand.hbm [shape: f32[8,32], index: 2, kind: input, shape index: {}]   ;;  %s2715_s3 = inlined_call_operand.vmem [shape: f32[8,32], index: 3, kind: input, shape index: {}]   ;;  %s2716_s4 = inlined_call_operand.hbm [shape: f32[128,128], index: 4, kind: input, shape index: {}]   ;;  %s2717_s5 = inlined_call_operand.hbm [shape: f32[32,256], index: 5, kind: input, shape index: {}]   ;;  %s2718_s6 = inlined_call_operand.vmem [shape: f32[1,128], index: 6, kind: input, shape index: {}]   ;;  %s2719_s7 = inlined_call_operand.hbm [shape: f32[8,8,128], index: 7, kind: output, shape index: {}]  }
   0x1   :  { %13 = vsyncpa [#allocation3], 0 }
   0x2   :  { %14 = vsyncpa [#allocation8], 0 }
   0x3   :  { %15 = vsyncpa [#allocation11], 0 }
   0x4   :  { %16 = vsyncpa [#allocation4], 0  ;;  %s2303_s24 = smov [#allocation7]   ;;  %s2304_s26 = smov [#allocation6]  }
   0x5   :  { %s43_s25 = sshll.u32 %s2303_s24, 4  ;;  %s30_s27 = sshll.u32 %s2304_s26, 4  ;;  %s44_s25 = int_to_ptr.vmem [resolvable:$true] %s43_s25  ;;  %s31_s27 = int_to_ptr.vmem [resolvable:$true] %s30_s27 }
   0x6   :  { %s2173_s30 = scalar_lea.hbm %s2714_s2, 128 }
   0x7   :  { %p2174_p0 = scmp.ne.s32.totalorder %s2714_s2, %s2173_s30  ;;  %p2177_p1 = scmp.lt.u32.totalorder %s2173_s30, %s2714_s2 }
   0x9   :  { %p2179_p2 = pnand %p2177_p1, %p2174_p0 }
   0xb   :  { %2182 = shalt.err (!%p2179_p2)
}
   0xc   :  { %s2183_s12 = scalar_lea.vmem %s44_s25, 128  ;;  %p2188_p4 = scmp.lt.s32.totalorder %s44_s25, %s44_s25 }
   0xd   :  { %p2184_p3 = scmp.ne.s32.totalorder %s44_s25, %s2183_s12  ;;  %p2189_p5 = scmp.lt.s32.totalorder %s2183_s12, %s2183_s12 }
   0xf   :  { %p2190_p6 = por %p2189_p5, %p2188_p4 }
  0x11   :  { %p2191_p7 = pnand %p2190_p6, %p2184_p3 }
  0x13   :  { %2194 = shalt.err (!%p2191_p7)
}
  0x14   :  { %46 = dma.hbm_to_vmem [thread:$0]  %s2714_s2, 128, %s44_s25, [#allocation8]  }
  0x15   :  { %s2195_s17 = scalar_lea.hbm %s2712_s0, 16 }
  0x16   :  { %p2196_p8 = scmp.ne.s32.totalorder %s2712_s0, %s2195_s17  ;;  %p2199_p9 = scmp.lt.u32.totalorder %s2195_s17, %s2712_s0 }
  0x18   :  { %p2201_p10 = pnand %p2199_p9, %p2196_p8 }
  0x1a   :  { %2204 = shalt.err (!%p2201_p10)
}
  0x1b   :  { %s2305_s22 = smov [#allocation2]   ;;  %s2205_s26 = scalar_lea.hbm %s2713_s1, 1024 }
  0x1c   :  { %24 = dma.hbm_to_smem %s2712_s0, 16, %s2305_s22, [#allocation5]  }
  0x1d   :  { %p2206_p11 = scmp.ne.s32.totalorder %s2713_s1, %s2205_s26  ;;  %p2209_p12 = scmp.lt.u32.totalorder %s2205_s26, %s2713_s1 }
  0x1f   :  { %p2211_p13 = pnand %p2209_p12, %p2206_p11 }
  0x21   :  { %2214 = shalt.err (!%p2211_p13)
}
  0x22   :  { %s2215_s9 = scalar_lea.vmem %s31_s27, 1024  ;;  %p2220_p1 = scmp.lt.s32.totalorder %s31_s27, %s31_s27 }
  0x23   :  { %p2216_p0 = scmp.ne.s32.totalorder %s31_s27, %s2215_s9  ;;  %p2221_p2 = scmp.lt.s32.totalorder %s2215_s9, %s2215_s9 }
  0x25   :  { %p2222_p3 = por %p2221_p2, %p2220_p1 }
  0x27   :  { %p2223_p4 = pnand %p2222_p3, %p2216_p0 }
  0x29   :  { %2226 = shalt.err (!%p2223_p4)
}
  0x2a   :  { %s2306_s0 = smov 128   ;;  %s2307_s10 = smov 8  }
  0x2b   :  { %36 = dma.hbm_to_vmem [thread:$0]  %s2713_s1, 1024, %s31_s27, [#allocation3], %s2306_s0, %s2306_s0, %s2307_s10  }
  0x2c   :  { %s2308_s13 = smov [#allocation9]   ;;  %s2309_s15 = smov [#allocation10]  }
  0x2d   :  { %s54_s14 = sshll.u32 %s2308_s13, 4  ;;  %s66_s16 = sshll.u32 %s2309_s15, 4  ;;  %s55_s14 = int_to_ptr.vmem [resolvable:$true] %s54_s14  ;;  %s67_s16 = int_to_ptr.vmem [resolvable:$true] %s66_s16 }
  0x2e   :  { %s2227_s19 = scalar_lea.hbm %s2716_s4, 2048 }
  0x2f   :  { %p2228_p5 = scmp.ne.s32.totalorder %s2716_s4, %s2227_s19  ;;  %p2231_p6 = scmp.lt.u32.totalorder %s2227_s19, %s2716_s4 }
  0x31   :  { %p2233_p7 = pnand %p2231_p6, %p2228_p5 }
  0x33   :  { %2236 = shalt.err (!%p2233_p7)
}
  0x34   :  { %s2237_s1 = scalar_lea.vmem %s55_s14, 2048  ;;  %p2242_p9 = scmp.lt.s32.totalorder %s55_s14, %s55_s14 }
  0x35   :  { %p2238_p8 = scmp.ne.s32.totalorder %s55_s14, %s2237_s1  ;;  %p2243_p10 = scmp.lt.s32.totalorder %s2237_s1, %s2237_s1 }
  0x37   :  { %p2244_p11 = por %p2243_p10, %p2242_p9 }
  0x39   :  { %p2245_p12 = pnand %p2244_p11, %p2238_p8 }
  0x3b   :  { %2248 = shalt.err (!%p2245_p12)
}
  0x3c   :  { %60 = dma.hbm_to_vmem [thread:$0]  %s2716_s4, 2048, %s55_s14, [#allocation8], %s2306_s0, %s2306_s0, %s2307_s10  }
  0x3d   :  { %s2249_s26 = scalar_lea.hbm %s2717_s5, 1024 }
  0x3e   :  { %p2250_p13 = scmp.ne.s32.totalorder %s2717_s5, %s2249_s26  ;;  %p2253_p0 = scmp.lt.u32.totalorder %s2249_s26, %s2717_s5 }
  0x40   :  { %p2255_p1 = pnand %p2253_p0, %p2250_p13 }
  0x42   :  { %2258 = shalt.err (!%p2255_p1)
}
  0x43   :  { %s2259_s9 = scalar_lea.vmem %s67_s16, 1024  ;;  %p2264_p3 = scmp.lt.s32.totalorder %s67_s16, %s67_s16 }
  0x44   :  { %p2260_p2 = scmp.ne.s32.totalorder %s67_s16, %s2259_s9  ;;  %p2265_p4 = scmp.lt.s32.totalorder %s2259_s9, %s2259_s9 }
  0x46   :  { %p2266_p5 = por %p2265_p4, %p2264_p3 }
  0x48   :  { %p2267_p6 = pnand %p2266_p5, %p2260_p2 }
  0x4a   :  { %2270 = shalt.err (!%p2267_p6)
}
  0x4b   :  { %s2310_s4 = smov 256   ;;  %s2311_s11 = smov 16  }
  0x4c   :  { %72 = dma.hbm_to_vmem [thread:$0]  %s2717_s5, 1024, %s67_s16, [#allocation11], %s2310_s4, %s2310_s4, %s2311_s11  }
  0x4d   :  { %2293 = dma.done.wait [#allocation5], 16  }
  0x4e   :  { %2294 = vsyncadd [#allocation5], 4294967280 }
  0x4f   :  { %2295 = dma.done.wait [#allocation3], 1024  }
  0x50   :  { %2296 = vsyncadd [#allocation3], 4294966272 }
  0x51   :  { %2297 = dma.done.wait [#allocation8], 2176  }
  0x52   :  { %2298 = vsyncadd [#allocation8], 4294965120 }
  0x53   :  { %2299 = dma.done.wait [#allocation11], 1024  }
  0x54   :  { %2300 = vsyncadd [#allocation11], 4294966272 }
  0x55   :  { %90 = sfence }
  0x56   :  { %v111_v0 = vld [vmem:[#allocation10 + $0x8] sm:$0xff]  ;;  %v113_v1 = vld [vmem:[#allocation10 + $0x18] sm:$0xff]  ;;  %v110_v2 = vld [vmem:[#allocation10] sm:$0xff]  ;;  %v2312_v7 = vmov 0.0   ;;  %vm127_vm0 = vcmask 261120   ;;  %s2313_s5 = smov 64   ;;  %v92_v38 = vlaneseq }
  0x57   :  { %v2425_v3 = vpack.c.bf16 %v113_v1, %v111_v0  ;;  %v112_v4 = vld [vmem:[#allocation10 + $0x10] sm:$0xff]  ;;  %v115_v5 = vld [vmem:[#allocation10 + $0x28] sm:$0xff]  ;;  %v117_v6 = vld [vmem:[#allocation10 + $0x38] sm:$0xff]  ;;  %195 = vmatprep.mubr.f32.mxu0 %v2312_v7  ;;  %91 = vst [vmem:[#allocation12] sm:$0xff] %v2312_v7  ;;  %300 = vmatprep.mubr.f32.mxu1 %v2312_v7  ;;  %s2314_s16 = smov 32   ;;  %v2315_v47 = vmov 0.0|0.0  }
  0x58   :  { %v2430_v8 = vpack.c.bf16 %v112_v4, %v110_v2  ;;  %v2432_v9 = vpack.c.bf16 %v117_v6, %v115_v5  ;;  %v114_v10 = vld [vmem:[#allocation10 + $0x20] sm:$0xff]  ;;  %v116_v11 = vld [vmem:[#allocation10 + $0x30] sm:$0xff]  ;;  %v125_v13 = vld [vmem:[#allocation7] sm:$0xff]  ;;  %v2470_v39 = vand.u32 127, %v92_v38  ;;  %vm2316_vm3 = vmmov 0   ;;  %s1558_s19 = sld [smem:[#allocation2 + $0x2]] }
  0x59   :  { %1894 = vmatprep.subr.bf16.mxu0 %v2425_v3  ;;  %1902 = vmatprep.subr.bf16.mxu1 %v2425_v3  ;;  %v2437_v12 = vpack.c.bf16 %v116_v11, %v114_v10  ;;  %v201_v14 = vld [vmem:[#allocation6] sm:$0xff]  ;;  %v126_v19 = vld [vmem:[%s2715_s3] sm:$0xff]  ;;  %v94_v44 = vld [vmem:[#allocation9] sm:$0xff]  ;;  %s1563_s21 = sld [smem:[#allocation2 + $0x3]]  ;;  %s1568_s23 = sld [smem:[#allocation2 + $0x4]] }
  0x5a   :  { %1896 = vmatpush1.bf16.msra.mxu0 %v2430_v8  ;;  %1904 = vmatpush1.bf16.msra.mxu1 %v2430_v8  ;;  %v2465_v34 = vld [vmem:[%s2718_s6] ss:$0 sm:$0xff]  ;;  %v95_v45 = vld [vmem:[#allocation9 + $0x8] sm:$0xff]  ;;  %v97_v49 = vld [vmem:[#allocation9 + $0x18] sm:$0xff]  ;;  %s1553_s6 = sld [smem:[#allocation2 + $0x1]]  ;;  %s1573_s27 = sld [smem:[#allocation2 + $0x5]] }
  0x5b   :  { %1898 = vmatprep.subr.bf16.mxu0 %v2432_v9  ;;  %1906 = vmatprep.subr.bf16.mxu1 %v2432_v9  ;;  %v96_v46 = vld [vmem:[#allocation9 + $0x10] sm:$0xff]  ;;  %v2474_v48 = vpack.c.bf16 %v95_v45, %v94_v44  ;;  %v98_v51 = vld [vmem:[#allocation9 + $0x20] sm:$0xff]  ;;  %v99_v52 = vld [vmem:[#allocation9 + $0x28] sm:$0xff]  ;;  %s1578_s2 = sld [smem:[#allocation2 + $0x6]]  ;;  %s2318_s26 = smov [#allocation12]  }
  0x5c   :  { %v2478_v50 = vpack.c.bf16 %v97_v49, %v96_v46  ;;  %v2482_v53 = vpack.c.bf16 %v99_v52, %v98_v51  ;;  %v100_v54 = vld [vmem:[#allocation9 + $0x30] sm:$0xff]  ;;  %v101_v55 = vld [vmem:[#allocation9 + $0x38] sm:$0xff]  ;;  %v102_v57 = vld [vmem:[#allocation9 + $0x40] sm:$0xff]  ;;  %s1532_s28 = sshll.u32 %s2318_s26, 4  ;;  %s1533_s28 = int_to_ptr.vmem [resolvable:$true] %s1532_s28 }
  0x5d   :  { %v2486_v56 = vpack.c.bf16 %v101_v55, %v100_v54  ;;  %v103_v58 = vld [vmem:[#allocation9 + $0x48] sm:$0xff]  ;;  %v104_v60 = vld [vmem:[#allocation9 + $0x50] sm:$0xff]  ;;  %v105_v61 = vld [vmem:[#allocation9 + $0x58] sm:$0xff]  ;;  %s2271_s29 = scalar_lea.vmem %s1533_s28, 1024  ;;  %p2276_p0 = scmp.lt.s32.totalorder %s1533_s28, %s1533_s28 }
  0x5e   :  { %1900 = vmatpush1.bf16.msra.mxu0 %v2437_v12  ;;  %1908 = vmatpush1.bf16.msra.mxu1 %v2437_v12  ;;  %v2490_v59 = vpack.c.bf16 %v103_v58, %v102_v57  ;;  %v2494_v62 = vpack.c.bf16 %v105_v61, %v104_v60  ;;  %v106_v63 = vld [vmem:[#allocation9 + $0x60] sm:$0xff]  ;;  %v107_v0 = vld [vmem:[#allocation9 + $0x68] sm:$0xff]  ;;  %v108_v10 = vld [vmem:[#allocation9 + $0x70] sm:$0xff]  ;;  %p605_p8 = scmp.ne.s32.totalorder %s1558_s19, 0  ;;  %p2272_p13 = scmp.ne.s32.totalorder %s1533_s28, %s2271_s29 }
  0x5f   :  { %1934 = vmatprep.subr.bf16.mxu1 %v2425_v3  ;;  %1909 = vmatprep.subr.bf16.mxu0 %v2315_v47  ;;  %v2498_v1 = vpack.c.bf16 %v107_v0, %v106_v63  ;;  %v109_v11 = vld [vmem:[#allocation9 + $0x78] sm:$0xff]  ;;  %p808_p9 = scmp.ne.s32.totalorder %s1563_s21, 0  ;;  %p1011_p10 = scmp.ne.s32.totalorder %s1568_s23, 0 }
  0x60   :  { %p402_p7 = scmp.ne.s32.totalorder %s1553_s6, 0  ;;  %p1214_p11 = scmp.ne.s32.totalorder %s1573_s27, 0 }
  0x61   :  { %1548 = vmatmul.mubr.msk.f32.vlgmr.msra.gmra.mrb[0].mxu0 %vm127_vm0, %v125_v13  ;;  %v2503_v13 = vpack.c.bf16 %v109_v11, %v108_v10  ;;  %s608_s20 = scalar_select %p605_p8, 1, 0 }
  0x62   :  { %1911 = vmatpush3.bf16.msra.mxu0 %v2474_v48  ;;  %1715 = vmatprep.mubr.msk.f32.mxu0 %vm2316_vm3, %v2312_v7  ;;  %s405_s18 = scalar_select %p402_p7, 1, 0 }
  0x63   :  { %1912 = vmatprep.subr.bf16.mxu0 %v2315_v47  ;;  %s811_s22 = scalar_select %p808_p9, 1, 0 }
  0x64   :  { %s1014_s1 = scalar_select %p1011_p10, 1, 0 }
  0x65   :  { %s1217_s24 = scalar_select %p1214_p11, 1, 0 }
  0x66   :  { %1914 = vmatpush3.bf16.msra.mxu0 %v2478_v50  ;;  %p1417_p12 = scmp.ne.s32.totalorder %s1578_s2, 0  ;;  %p2277_p1 = scmp.lt.s32.totalorder %s2271_s29, %s2271_s29 }
  0x67   :  { %1915 = vmatprep.subr.bf16.mxu0 %v2315_v47 }
  0x68   :  { %s1420_s25 = scalar_select %p1417_p12, 1, 0 }
  0x69   :  { %p2278_p2 = por %p2277_p1, %p2276_p0 }
  0x6a   :  { %1917 = vmatpush3.bf16.msra.mxu0 %v2482_v53 }
  0x6b   :  { %1918 = vmatprep.subr.bf16.mxu0 %v2315_v47  ;;  %p2279_p3 = pnand %p2278_p2, %p2272_p13 }
  0x6e   :  { %1920 = vmatpush3.bf16.msra.mxu0 %v2486_v56 }
  0x6f   :  { %1921 = vmatprep.subr.bf16.mxu0 %v2315_v47 }
  0x72   :  { %1923 = vmatpush3.bf16.msra.mxu0 %v2490_v59 }
  0x73   :  { %1924 = vmatprep.subr.bf16.mxu0 %v2315_v47 }
  0x76   :  { %1926 = vmatpush3.bf16.msra.mxu0 %v2494_v62 }
  0x77   :  { %1927 = vmatprep.subr.bf16.mxu0 %v2315_v47 }
  0x7a   :  { %1929 = vmatpush3.bf16.msra.mxu0 %v2498_v1 }
  0x7b   :  { %1930 = vmatprep.subr.bf16.mxu0 %v2315_v47 }
  0x7e   :  { %1932 = vmatpush3.bf16.msra.mxu0 %v2503_v13 }
  0x7f   :  { %1966 = vmatprep.subr.bf16.mxu0 %v2425_v3 }
 0x134   :  { %v197_v15 = vpop.f32.mrb[0].mxu0 }
 0x135   :  { %v202_v16 = vadd.f32 %v201_v14, %v197_v15  ;;  %v199_v17 = vpop.f32.mrb[1].mxu0 }
 0x137   :  { %2117 = vtanh.f32 %v202_v16  ;;  %v1549_v20 = vmul.f32 -1.442695, %v202_v16 }
 0x139   :  { %2119 = vpow2.f32 %v1549_v20  ;;  %v406_v20 = vstv %s405_s18 }
 0x13a   :  { %vm407_vm5 = vcmp.eq.s32.totalorder %v406_v20, 1 }
 0x141   :  { %v2118_v18 = vpop.eup %2117 }
 0x142   :  { %216 = vrot.lane.b32.xlu0 %v2118_v18, %s2313_s5 }
 0x143   :  { %v2120_v21 = vpop.eup %2119 }
 0x144   :  { %v206_v22 = vadd.f32 1.0, %v2120_v21  ;;  %v404_v21 = vld [vmem:[#allocation6 + $0x8] sm:$0xff] }
 0x146   :  { %211 = vrot.lane.b32.xlu0 %v126_v19, %s2314_s16  ;;  %2121 = vrcp.f32 %v206_v22  ;;  %v2317_v19 = vmov 1.0  }
 0x150   :  { %v2122_v23 = vpop.eup %2121 }
 0x1b4   :  { %v217_v24 = vpop.permute.xlu0 %216 }
 0x1b5   :  { %v219_v25 = vmul.f32 %v2122_v23, %v217_v24 }
 0x1b7   :  { %221 = vrot.lane.b32.xlu1 %v219_v25, %s2314_s16 }
 0x1b8   :  { %v212_v26 = vpop.permute.xlu0 %211 }
 0x1b9   :  { %v214_v27 = vmul.f32 %v2122_v23, %v212_v26 }
 0x229   :  { %v222_v28 = vpop.permute.xlu1 %221 }
 0x22a   :  { %v2452_v29 = vadd.f32 %v222_v28, %v214_v27 }
 0x22c   :  { %2123 = vtanh.f32 %v2452_v29 }
 0x236   :  { %v2124_v30 = vpop.eup %2123 }
 0x237   :  { %227 = vrot.lane.b32.xlu1 %v2124_v30, %s2313_s5 }
 0x2a9   :  { %v228_v31 = vpop.permute.xlu1 %227 }
 0x2aa   :  { %v230_v32 = vmul.f32 %v2122_v23, %v228_v31 }
 0x2ac   :  { %232 = vrot.lane.b32.xlu0 %v230_v32, %s2314_s16 }
 0x31e   :  { %v233_v33 = vpop.permute.xlu0 %232 }
 0x31f   :  { %1550 = vmatmul.mubr.msk.f32.vlgmr.msra.gmra.mrb[0].mxu1 %vm127_vm0, %v233_v33 }
 0x320   :  { %1936 = vmatpush1.bf16.msra.mxu1 %v2430_v8  ;;  %503 = vmatprep.mubr.f32.mxu1 %v2312_v7 }
 0x321   :  { %1938 = vmatprep.subr.bf16.mxu1 %v2432_v9 }
 0x324   :  { %1940 = vmatpush1.bf16.msra.mxu1 %v2437_v12 }
 0x325   :  { %1941 = vmatprep.subr.bf16.mxu1 %v2315_v47 }
 0x3f2   :  { %v2467_v35 = vpop.f32.mrb[0].mxu1 }
 0x3f3   :  { %v304_v36 = vpop.f32.mrb[1].mxu1 }
 0x3f4   :  { %v307_v37 = vadd.f32 %v2465_v34, %v304_v36 }
 0x3f6   :  { %309 = vst [vmem:[#allocation12 + $0x8] sm:$0xff] %v307_v37  ;;  %310 = vmax.xlane.f32.xlu1 %v307_v37 }
 0x483   :  { %v311_v40 = vpop.xlane.xlu1 %310 }
 0x484   :  { %vm312_vm1 = vcmp.eq.f32.partialorder %v307_v37, %v311_v40 }
 0x485   :  { %v313_v41 = vsel %vm312_vm1, %v2470_v39, 128 }
 0x486   :  { %v315_v42 = vshra.s32 %v313_v41, 16  ;;  %v314_v2 = vand.u32 65535, %v313_v41 }
 0x488   :  { %v317_v43 = vcvt.s32.f32 %v315_v42  ;;  %v316_v5 = vcvt.s32.f32 %v314_v2  ;;  %v609_v2 = vstv %s608_s20 }
 0x489   :  { %vm610_vm9 = vcmp.eq.s32.totalorder %v609_v2, 1 }
 0x48a   :  { %318 = vmin.xlane.f32.xlu0 %v317_v43 }
 0x517   :  { %v319_v4 = vpop.xlane.xlu0 %318 }
 0x518   :  { %vm320_vm2 = vcmp.eq.f32.partialorder %v317_v43, %v319_v4  ;;  %v325_v14 = vcvt.f32.s32 %v319_v4  ;;  %v607_v4 = vld [vmem:[#allocation6 + $0x10] sm:$0xff] }
 0x519   :  { %v321_v6 = vsel %vm320_vm2, %v316_v5, inf }
 0x51a   :  { %322 = vmin.xlane.f32.xlu0 %v321_v6  ;;  %v326_v16 = vshll.u32 %v325_v14, 16 }
 0x5a7   :  { %v323_v15 = vpop.xlane.xlu0 %322 }
 0x5a8   :  { %v324_v17 = vcvt.f32.s32 %v323_v15 }
 0x5aa   :  { %v327_v18 = vadd.s32 %v326_v16, %v324_v17 }
 0x5ac   :  { %vm328_vm4 = vcmp.eq.s32.totalorder %v2470_v39, %v327_v18 }
 0x5ad   :  { %1716 = vmatmul.mubr.msk.f32.vlgmr.msra.gmra.mrb[2].mxu0 %vm328_vm4, %v2317_v19 }
 0x5ae   :  { %1968 = vmatpush1.bf16.msra.mxu0 %v2430_v8  ;;  %706 = vmatprep.mubr.f32.mxu0 %v2312_v7 }
 0x5af   :  { %1970 = vmatprep.subr.bf16.mxu0 %v2432_v9 }
 0x5b2   :  { %1972 = vmatpush1.bf16.msra.mxu0 %v2437_v12 }
 0x5b3   :  { %1973 = vmatprep.subr.bf16.mxu0 %v2315_v47 }
 0x680   :  { %v397_v22 = vpop.f32.mrb[2].mxu0 }
 0x681   :  { %v408_v23 = vsel %vm407_vm5, %v404_v21, %v397_v22  ;;  %v1717_v24 = vpop.f32.mrb[3].mxu0 }
 0x682   :  { %v409_v25 = vadd.f32 %v408_v23, %v2467_v35 }
 0x684   :  { %2125 = vtanh.f32 %v409_v25  ;;  %v1554_v27 = vmul.f32 -1.442695, %v409_v25 }
 0x686   :  { %2127 = vpow2.f32 %v1554_v27 }
 0x68e   :  { %v2126_v26 = vpop.eup %2125 }
 0x68f   :  { %419 = vrot.lane.b32.xlu1 %v2126_v26, %s2313_s5 }
 0x690   :  { %v2128_v28 = vpop.eup %2127 }
 0x691   :  { %v413_v30 = vadd.f32 1.0, %v2128_v28 }
 0x693   :  { %2129 = vrcp.f32 %v413_v30 }
 0x69d   :  { %v2130_v31 = vpop.eup %2129 }
 0x69e   :  { %v417_v36 = vmul.f32 %v2130_v31, %v2452_v29 }
 0x701   :  { %v420_v32 = vpop.permute.xlu1 %419 }
 0x702   :  { %v422_v33 = vmul.f32 %v2130_v31, %v420_v32 }
 0x704   :  { %424 = vrot.lane.b32.xlu0 %v422_v33, %s2314_s16 }
 0x776   :  { %v425_v37 = vpop.permute.xlu0 %424 }
 0x777   :  { %v2520_v38 = vadd.f32 %v425_v37, %v417_v36 }
 0x779   :  { %2131 = vtanh.f32 %v2520_v38 }
 0x783   :  { %v2132_v35 = vpop.eup %2131 }
 0x784   :  { %430 = vrot.lane.b32.xlu1 %v2132_v35, %s2313_s5 }
 0x7f6   :  { %v431_v40 = vpop.permute.xlu1 %430 }
 0x7f7   :  { %v433_v41 = vmul.f32 %v2130_v31, %v431_v40 }
 0x7f9   :  { %435 = vrot.lane.b32.xlu1 %v433_v41, %s2314_s16 }
 0x86b   :  { %v436_v42 = vpop.permute.xlu1 %435 }
 0x86c   :  { %1555 = vmatmul.mubr.msk.f32.vlgmr.msra.gmra.mrb[2].mxu1 %vm127_vm0, %v436_v42 }
 0x86d   :  { %1943 = vmatpush3.bf16.msra.mxu1 %v2474_v48  ;;  %1750 = vmatprep.mubr.msk.f32.mxu1 %vm2316_vm3, %v2312_v7 }
 0x86e   :  { %1944 = vmatprep.subr.bf16.mxu1 %v2315_v47 }
 0x871   :  { %1946 = vmatpush3.bf16.msra.mxu1 %v2478_v50 }
 0x872   :  { %1947 = vmatprep.subr.bf16.mxu1 %v2315_v47 }
 0x875   :  { %1949 = vmatpush3.bf16.msra.mxu1 %v2482_v53 }
 0x876   :  { %1950 = vmatprep.subr.bf16.mxu1 %v2315_v47 }
 0x879   :  { %1952 = vmatpush3.bf16.msra.mxu1 %v2486_v56 }
 0x87a   :  { %1953 = vmatprep.subr.bf16.mxu1 %v2315_v47 }
 0x87d   :  { %1955 = vmatpush3.bf16.msra.mxu1 %v2490_v59 }
 0x87e   :  { %1956 = vmatprep.subr.bf16.mxu1 %v2315_v47 }
 0x881   :  { %1958 = vmatpush3.bf16.msra.mxu1 %v2494_v62 }
 0x882   :  { %1959 = vmatprep.subr.bf16.mxu1 %v2315_v47 }
 0x885   :  { %1961 = vmatpush3.bf16.msra.mxu1 %v2498_v1 }
 0x886   :  { %1962 = vmatprep.subr.bf16.mxu1 %v2315_v47 }
 0x889   :  { %1964 = vmatpush3.bf16.msra.mxu1 %v2503_v13 }
 0x88a   :  { %1998 = vmatprep.subr.bf16.mxu1 %v2425_v3 }
 0x93f   :  { %v505_v29 = vpop.f32.mrb[2].mxu1 }
 0x940   :  { %v507_v43 = vpop.f32.mrb[3].mxu1 }
 0x941   :  { %v510_v44 = vadd.f32 %v2465_v34, %v507_v43 }
 0x943   :  { %512 = vst [vmem:[#allocation12 + $0x10] sm:$0xff] %v510_v44  ;;  %513 = vmax.xlane.f32.xlu0 %v510_v44 }
 0x9d0   :  { %v514_v45 = vpop.xlane.xlu0 %513 }
 0x9d1   :  { %vm515_vm6 = vcmp.eq.f32.partialorder %v510_v44, %v514_v45 }
 0x9d2   :  { %v516_v46 = vsel %vm515_vm6, %v2470_v39, 128 }
 0x9d3   :  { %v518_v49 = vshra.s32 %v516_v46, 16  ;;  %v517_v52 = vand.u32 65535, %v516_v46 }
 0x9d5   :  { %v520_v51 = vcvt.s32.f32 %v518_v49  ;;  %v519_v55 = vcvt.s32.f32 %v517_v52  ;;  %v812_v49 = vstv %s811_s22 }
 0x9d6   :  { %vm813_vm13 = vcmp.eq.s32.totalorder %v812_v49, 1 }
 0x9d7   :  { %521 = vmin.xlane.f32.xlu1 %v520_v51 }
 0xa64   :  { %v522_v54 = vpop.xlane.xlu1 %521 }
 0xa65   :  { %vm523_vm7 = vcmp.eq.f32.partialorder %v520_v51, %v522_v54  ;;  %v528_v58 = vcvt.f32.s32 %v522_v54  ;;  %v810_v51 = vld [vmem:[#allocation6 + $0x18] sm:$0xff] }
 0xa66   :  { %v524_v57 = vsel %vm523_vm7, %v519_v55, inf }
 0xa67   :  { %525 = vmin.xlane.f32.xlu0 %v524_v57  ;;  %v529_v61 = vshll.u32 %v528_v58, 16 }
 0xaf4   :  { %v526_v60 = vpop.xlane.xlu0 %525 }
 0xaf5   :  { %v527_v63 = vcvt.f32.s32 %v526_v60 }
 0xaf7   :  { %v530_v0 = vadd.s32 %v529_v61, %v527_v63 }
 0xaf9   :  { %vm531_vm8 = vcmp.eq.s32.totalorder %v2470_v39, %v530_v0 }
 0xafa   :  { %1751 = vmatmul.mubr.msk.f32.vlgmr.msra.gmra.mrb[4].mxu1 %vm531_vm8, %v2317_v19 }
 0xafb   :  { %2000 = vmatpush1.bf16.msra.mxu1 %v2430_v8  ;;  %909 = vmatprep.mubr.f32.mxu1 %v2312_v7 }
 0xafc   :  { %2002 = vmatprep.subr.bf16.mxu1 %v2432_v9 }
 0xaff   :  { %2004 = vmatpush1.bf16.msra.mxu1 %v2437_v12 }
 0xb00   :  { %2005 = vmatprep.subr.bf16.mxu1 %v2315_v47 }
 0xbcd   :  { %v600_v5 = vpop.f32.mrb[4].mxu1 }
 0xbce   :  { %v611_v6 = vsel %vm610_vm9, %v607_v4, %v600_v5  ;;  %v1752_v10 = vpop.f32.mrb[5].mxu1 }
 0xbcf   :  { %v612_v11 = vadd.f32 %v611_v6, %v505_v29 }
 0xbd1   :  { %2133 = vtanh.f32 %v612_v11  ;;  %v1559_v15 = vmul.f32 -1.442695, %v612_v11 }
 0xbd3   :  { %2135 = vpow2.f32 %v1559_v15 }
 0xbdb   :  { %v2134_v14 = vpop.eup %2133 }
 0xbdc   :  { %622 = vrot.lane.b32.xlu0 %v2134_v14, %s2313_s5 }
 0xbdd   :  { %v2136_v16 = vpop.eup %2135 }
 0xbde   :  { %v616_v17 = vadd.f32 1.0, %v2136_v16 }
 0xbe0   :  { %2137 = vrcp.f32 %v616_v17 }
 0xbea   :  { %v2138_v18 = vpop.eup %2137 }
 0xbeb   :  { %v620_v22 = vmul.f32 %v2138_v18, %v2520_v38 }
 0xc4e   :  { %v623_v20 = vpop.permute.xlu0 %622 }
 0xc4f   :  { %v625_v21 = vmul.f32 %v2138_v18, %v623_v20 }
 0xc51   :  { %627 = vrot.lane.b32.xlu1 %v625_v21, %s2314_s16 }
 0xcc3   :  { %v628_v23 = vpop.permute.xlu1 %627 }
 0xcc4   :  { %v2556_v24 = vadd.f32 %v628_v23, %v620_v22 }
 0xcc6   :  { %2139 = vtanh.f32 %v2556_v24 }
 0xcd0   :  { %v2140_v25 = vpop.eup %2139 }
 0xcd1   :  { %633 = vrot.lane.b32.xlu1 %v2140_v25, %s2313_s5 }
 0xd43   :  { %v634_v26 = vpop.permute.xlu1 %633 }
 0xd44   :  { %v636_v27 = vmul.f32 %v2138_v18, %v634_v26 }
 0xd46   :  { %638 = vrot.lane.b32.xlu0 %v636_v27, %s2314_s16 }
 0xdb8   :  { %v639_v28 = vpop.permute.xlu0 %638 }
 0xdb9   :  { %1560 = vmatmul.mubr.msk.f32.vlgmr.msra.gmra.mrb[4].mxu0 %vm127_vm0, %v639_v28 }
 0xdba   :  { %1975 = vmatpush3.bf16.msra.mxu0 %v2474_v48  ;;  %1785 = vmatprep.mubr.msk.f32.mxu0 %vm2316_vm3, %v2312_v7 }
 0xdbb   :  { %1976 = vmatprep.subr.bf16.mxu0 %v2315_v47 }
 0xdbe   :  { %1978 = vmatpush3.bf16.msra.mxu0 %v2478_v50 }
 0xdbf   :  { %1979 = vmatprep.subr.bf16.mxu0 %v2315_v47 }
 0xdc2   :  { %1981 = vmatpush3.bf16.msra.mxu0 %v2482_v53 }
 0xdc3   :  { %1982 = vmatprep.subr.bf16.mxu0 %v2315_v47 }
 0xdc6   :  { %1984 = vmatpush3.bf16.msra.mxu0 %v2486_v56 }
 0xdc7   :  { %1985 = vmatprep.subr.bf16.mxu0 %v2315_v47 }
 0xdca   :  { %1987 = vmatpush3.bf16.msra.mxu0 %v2490_v59 }
 0xdcb   :  { %1988 = vmatprep.subr.bf16.mxu0 %v2315_v47 }
 0xdce   :  { %1990 = vmatpush3.bf16.msra.mxu0 %v2494_v62 }
 0xdcf   :  { %1991 = vmatprep.subr.bf16.mxu0 %v2315_v47 }
 0xdd2   :  { %1993 = vmatpush3.bf16.msra.mxu0 %v2498_v1 }
 0xdd3   :  { %1994 = vmatprep.subr.bf16.mxu0 %v2315_v47 }
 0xdd6   :  { %1996 = vmatpush3.bf16.msra.mxu0 %v2503_v13 }
 0xdd7   :  { %2030 = vmatprep.subr.bf16.mxu0 %v2425_v3 }
 0xe8c   :  { %v708_v30 = vpop.f32.mrb[4].mxu0 }
 0xe8d   :  { %v710_v31 = vpop.f32.mrb[5].mxu0 }
 0xe8e   :  { %v713_v32 = vadd.f32 %v2465_v34, %v710_v31 }
 0xe90   :  { %715 = vst [vmem:[#allocation12 + $0x18] sm:$0xff] %v713_v32  ;;  %716 = vmax.xlane.f32.xlu1 %v713_v32 }
 0xf1d   :  { %v717_v33 = vpop.xlane.xlu1 %716 }
 0xf1e   :  { %vm718_vm10 = vcmp.eq.f32.partialorder %v713_v32, %v717_v33 }
 0xf1f   :  { %v719_v36 = vsel %vm718_vm10, %v2470_v39, 128 }
 0xf20   :  { %v721_v37 = vshra.s32 %v719_v36, 16  ;;  %v720_v35 = vand.u32 65535, %v719_v36 }
 0xf22   :  { %v723_v38 = vcvt.s32.f32 %v721_v37  ;;  %v722_v41 = vcvt.s32.f32 %v720_v35  ;;  %v1015_v37 = vstv %s1014_s1 }
 0xf23   :  { %vm1016_vm2 = vcmp.eq.s32.totalorder %v1015_v37, 1 }
 0xf24   :  { %724 = vmin.xlane.f32.xlu0 %v723_v38 }
 0xfb1   :  { %v725_v40 = vpop.xlane.xlu0 %724 }
 0xfb2   :  { %vm726_vm11 = vcmp.eq.f32.partialorder %v723_v38, %v725_v40  ;;  %v731_v29 = vcvt.f32.s32 %v725_v40  ;;  %v1013_v38 = vld [vmem:[#allocation6 + $0x20] sm:$0xff] }
 0xfb3   :  { %v727_v42 = vsel %vm726_vm11, %v722_v41, inf }
 0xfb4   :  { %728 = vmin.xlane.f32.xlu0 %v727_v42  ;;  %v732_v44 = vshll.u32 %v731_v29, 16 }
0x1041   :  { %v729_v43 = vpop.xlane.xlu0 %728 }
0x1042   :  { %v730_v45 = vcvt.f32.s32 %v729_v43 }
0x1044   :  { %v733_v46 = vadd.s32 %v732_v44, %v730_v45 }
0x1046   :  { %vm734_vm12 = vcmp.eq.s32.totalorder %v2470_v39, %v733_v46 }
0x1047   :  { %1786 = vmatmul.mubr.msk.f32.vlgmr.msra.gmra.mrb[6].mxu0 %vm734_vm12, %v2317_v19 }
0x1048   :  { %2032 = vmatpush1.bf16.msra.mxu0 %v2430_v8  ;;  %1112 = vmatprep.mubr.f32.mxu0 %v2312_v7 }
0x1049   :  { %2034 = vmatprep.subr.bf16.mxu0 %v2432_v9 }
0x104c   :  { %2036 = vmatpush1.bf16.msra.mxu0 %v2437_v12 }
0x104d   :  { %2037 = vmatprep.subr.bf16.mxu0 %v2315_v47 }
0x111a   :  { %v803_v52 = vpop.f32.mrb[6].mxu0 }
0x111b   :  { %v814_v54 = vsel %vm813_vm13, %v810_v51, %v803_v52  ;;  %v1787_v55 = vpop.f32.mrb[7].mxu0 }
0x111c   :  { %v815_v57 = vadd.f32 %v814_v54, %v708_v30 }
0x111e   :  { %2141 = vtanh.f32 %v815_v57  ;;  %v1564_v60 = vmul.f32 -1.442695, %v815_v57 }
0x1120   :  { %2143 = vpow2.f32 %v1564_v60 }
0x1128   :  { %v2142_v58 = vpop.eup %2141 }
0x1129   :  { %825 = vrot.lane.b32.xlu1 %v2142_v58, %s2313_s5 }
0x112a   :  { %v2144_v61 = vpop.eup %2143 }
0x112b   :  { %v819_v63 = vadd.f32 1.0, %v2144_v61 }
0x112d   :  { %2145 = vrcp.f32 %v819_v63 }
0x1137   :  { %v2146_v0 = vpop.eup %2145 }
0x1138   :  { %v823_v5 = vmul.f32 %v2146_v0, %v2556_v24 }
0x119b   :  { %v826_v2 = vpop.permute.xlu1 %825 }
0x119c   :  { %v828_v4 = vmul.f32 %v2146_v0, %v826_v2 }
0x119e   :  { %830 = vrot.lane.b32.xlu0 %v828_v4, %s2314_s16 }
0x1210   :  { %v831_v6 = vpop.permute.xlu0 %830 }
0x1211   :  { %v2592_v10 = vadd.f32 %v831_v6, %v823_v5 }
0x1213   :  { %2147 = vtanh.f32 %v2592_v10 }
0x121d   :  { %v2148_v11 = vpop.eup %2147 }
0x121e   :  { %836 = vrot.lane.b32.xlu1 %v2148_v11, %s2313_s5 }
0x1290   :  { %v837_v14 = vpop.permute.xlu1 %836 }
0x1291   :  { %v839_v15 = vmul.f32 %v2146_v0, %v837_v14 }
0x1293   :  { %841 = vrot.lane.b32.xlu1 %v839_v15, %s2314_s16 }
0x1305   :  { %v842_v16 = vpop.permute.xlu1 %841 }
0x1306   :  { %1565 = vmatmul.mubr.msk.f32.vlgmr.msra.gmra.mrb[6].mxu1 %vm127_vm0, %v842_v16 }
0x1307   :  { %2007 = vmatpush3.bf16.msra.mxu1 %v2474_v48  ;;  %1820 = vmatprep.mubr.msk.f32.mxu1 %vm2316_vm3, %v2312_v7 }
0x1308   :  { %2008 = vmatprep.subr.bf16.mxu1 %v2315_v47 }
0x130b   :  { %2010 = vmatpush3.bf16.msra.mxu1 %v2478_v50 }
0x130c   :  { %2011 = vmatprep.subr.bf16.mxu1 %v2315_v47 }
0x130f   :  { %2013 = vmatpush3.bf16.msra.mxu1 %v2482_v53 }
0x1310   :  { %2014 = vmatprep.subr.bf16.mxu1 %v2315_v47 }
0x1313   :  { %2016 = vmatpush3.bf16.msra.mxu1 %v2486_v56 }
0x1314   :  { %2017 = vmatprep.subr.bf16.mxu1 %v2315_v47 }
0x1317   :  { %2019 = vmatpush3.bf16.msra.mxu1 %v2490_v59 }
0x1318   :  { %2020 = vmatprep.subr.bf16.mxu1 %v2315_v47 }
0x131b   :  { %2022 = vmatpush3.bf16.msra.mxu1 %v2494_v62 }
0x131c   :  { %2023 = vmatprep.subr.bf16.mxu1 %v2315_v47 }
0x131f   :  { %2025 = vmatpush3.bf16.msra.mxu1 %v2498_v1 }
0x1320   :  { %2026 = vmatprep.subr.bf16.mxu1 %v2315_v47 }
0x1323   :  { %2028 = vmatpush3.bf16.msra.mxu1 %v2503_v13 }
0x1324   :  { %2062 = vmatprep.subr.bf16.mxu1 %v2425_v3 }
0x13d9   :  { %v911_v17 = vpop.f32.mrb[6].mxu1 }
0x13da   :  { %v913_v18 = vpop.f32.mrb[7].mxu1 }
0x13db   :  { %v916_v20 = vadd.f32 %v2465_v34, %v913_v18 }
0x13dd   :  { %918 = vst [vmem:[#allocation12 + $0x20] sm:$0xff] %v916_v20  ;;  %919 = vmax.xlane.f32.xlu0 %v916_v20 }
0x146a   :  { %v920_v21 = vpop.xlane.xlu0 %919 }
0x146b   :  { %vm921_vm14 = vcmp.eq.f32.partialorder %v916_v20, %v920_v21 }
0x146c   :  { %v922_v22 = vsel %vm921_vm14, %v2470_v39, 128 }
0x146d   :  { %v924_v23 = vshra.s32 %v922_v22, 16  ;;  %v923_v25 = vand.u32 65535, %v922_v22  ;;  %v1218_v22 = vstv %s1217_s24 }
0x146e   :  { %vm1219_vm7 = vcmp.eq.s32.totalorder %v1218_v22, 1 }
0x146f   :  { %v926_v24 = vcvt.s32.f32 %v924_v23  ;;  %v925_v27 = vcvt.s32.f32 %v923_v25  ;;  %v1216_v23 = vld [vmem:[#allocation6 + $0x28] sm:$0xff] }
0x1471   :  { %927 = vmin.xlane.f32.xlu1 %v926_v24 }
0x14fe   :  { %v928_v26 = vpop.xlane.xlu1 %927 }
0x14ff   :  { %vm929_vm15 = vcmp.eq.f32.partialorder %v926_v24, %v928_v26  ;;  %v934_v30 = vcvt.f32.s32 %v928_v26 }
0x1500   :  { %v930_v28 = vsel %vm929_vm15, %v925_v27, inf }
0x1501   :  { %931 = vmin.xlane.f32.xlu0 %v930_v28  ;;  %v935_v32 = vshll.u32 %v934_v30, 16 }
0x158e   :  { %v932_v31 = vpop.xlane.xlu0 %931 }
0x158f   :  { %v933_v33 = vcvt.f32.s32 %v932_v31 }
0x1591   :  { %v936_v36 = vadd.s32 %v935_v32, %v933_v33 }
0x1593   :  { %vm937_vm1 = vcmp.eq.s32.totalorder %v2470_v39, %v936_v36 }
0x1594   :  { %1821 = vmatmul.mubr.msk.f32.vlgmr.msra.gmra.mrb[8].mxu1 %vm937_vm1, %v2317_v19 }
0x1595   :  { %2064 = vmatpush1.bf16.msra.mxu1 %v2430_v8  ;;  %1315 = vmatprep.mubr.f32.mxu1 %v2312_v7 }
0x1596   :  { %2066 = vmatprep.subr.bf16.mxu1 %v2432_v9 }
0x1599   :  { %2068 = vmatpush1.bf16.msra.mxu1 %v2437_v12 }
0x159a   :  { %2069 = vmatprep.subr.bf16.mxu1 %v2315_v47 }
0x1667   :  { %v1006_v35 = vpop.f32.mrb[8].mxu1 }
0x1668   :  { %v1017_v40 = vsel %vm1016_vm2, %v1013_v38, %v1006_v35  ;;  %v1822_v41 = vpop.f32.mrb[9].mxu1 }
0x1669   :  { %v1018_v42 = vadd.f32 %v1017_v40, %v911_v17 }
0x166b   :  { %2149 = vtanh.f32 %v1018_v42  ;;  %v1569_v43 = vmul.f32 -1.442695, %v1018_v42 }
0x166d   :  { %2151 = vpow2.f32 %v1569_v43 }
0x1675   :  { %v2150_v29 = vpop.eup %2149 }
0x1676   :  { %1028 = vrot.lane.b32.xlu0 %v2150_v29, %s2313_s5 }
0x1677   :  { %v2152_v44 = vpop.eup %2151 }
0x1678   :  { %v1022_v45 = vadd.f32 1.0, %v2152_v44 }
0x167a   :  { %2153 = vrcp.f32 %v1022_v45 }
0x1684   :  { %v2154_v46 = vpop.eup %2153 }
0x1685   :  { %v1026_v52 = vmul.f32 %v2154_v46, %v2592_v10 }
0x16e8   :  { %v1029_v49 = vpop.permute.xlu0 %1028 }
0x16e9   :  { %v1031_v51 = vmul.f32 %v2154_v46, %v1029_v49  ;;  %v1421_v49 = vstv %s1420_s25 }
0x16ea   :  { %vm1422_vm10 = vcmp.eq.s32.totalorder %v1421_v49, 1 }
0x16eb   :  { %1033 = vrot.lane.b32.xlu1 %v1031_v51, %s2314_s16  ;;  %v1419_v51 = vld [vmem:[#allocation6 + $0x30] sm:$0xff] }
0x175d   :  { %v1034_v54 = vpop.permute.xlu1 %1033 }
0x175e   :  { %v2628_v55 = vadd.f32 %v1034_v54, %v1026_v52 }
0x1760   :  { %2155 = vtanh.f32 %v2628_v55 }
0x176a   :  { %v2156_v57 = vpop.eup %2155 }
0x176b   :  { %1039 = vrot.lane.b32.xlu1 %v2156_v57, %s2313_s5 }
0x17dd   :  { %v1040_v58 = vpop.permute.xlu1 %1039 }
0x17de   :  { %v1042_v60 = vmul.f32 %v2154_v46, %v1040_v58 }
0x17e0   :  { %1044 = vrot.lane.b32.xlu0 %v1042_v60, %s2314_s16 }
0x1852   :  { %v1045_v61 = vpop.permute.xlu0 %1044 }
0x1853   :  { %1570 = vmatmul.mubr.msk.f32.vlgmr.msra.gmra.mrb[8].mxu0 %vm127_vm0, %v1045_v61 }
0x1854   :  { %2039 = vmatpush3.bf16.msra.mxu0 %v2474_v48  ;;  %1855 = vmatprep.mubr.msk.f32.mxu0 %vm2316_vm3, %v2312_v7 }
0x1855   :  { %2040 = vmatprep.subr.bf16.mxu0 %v2315_v47 }
0x1858   :  { %2042 = vmatpush3.bf16.msra.mxu0 %v2478_v50 }
0x1859   :  { %2043 = vmatprep.subr.bf16.mxu0 %v2315_v47 }
0x185c   :  { %2045 = vmatpush3.bf16.msra.mxu0 %v2482_v53 }
0x185d   :  { %2046 = vmatprep.subr.bf16.mxu0 %v2315_v47 }
0x1860   :  { %2048 = vmatpush3.bf16.msra.mxu0 %v2486_v56 }
0x1861   :  { %2049 = vmatprep.subr.bf16.mxu0 %v2315_v47 }
0x1864   :  { %2051 = vmatpush3.bf16.msra.mxu0 %v2490_v59 }
0x1865   :  { %2052 = vmatprep.subr.bf16.mxu0 %v2315_v47 }
0x1868   :  { %2054 = vmatpush3.bf16.msra.mxu0 %v2494_v62 }
0x1869   :  { %2055 = vmatprep.subr.bf16.mxu0 %v2315_v47 }
0x186c   :  { %2057 = vmatpush3.bf16.msra.mxu0 %v2498_v1 }
0x186d   :  { %2058 = vmatprep.subr.bf16.mxu0 %v2315_v47 }
0x1870   :  { %2060 = vmatpush3.bf16.msra.mxu0 %v2503_v13 }
0x1871   :  { %2094 = vmatprep.subr.bf16.mxu0 %v2425_v3 }
0x1926   :  { %v1114_v63 = vpop.f32.mrb[8].mxu0 }
0x1927   :  { %v1116_v0 = vpop.f32.mrb[9].mxu0 }
0x1928   :  { %v1119_v2 = vadd.f32 %v2465_v34, %v1116_v0 }
0x192a   :  { %1121 = vst [vmem:[#allocation12 + $0x28] sm:$0xff] %v1119_v2  ;;  %1122 = vmax.xlane.f32.xlu1 %v1119_v2 }
0x19b7   :  { %v1123_v4 = vpop.xlane.xlu1 %1122 }
0x19b8   :  { %vm1124_vm4 = vcmp.eq.f32.partialorder %v1119_v2, %v1123_v4 }
0x19b9   :  { %v1125_v5 = vsel %vm1124_vm4, %v2470_v39, 128 }
0x19ba   :  { %v1127_v6 = vshra.s32 %v1125_v5, 16  ;;  %v1126_v11 = vand.u32 65535, %v1125_v5 }
0x19bc   :  { %v1129_v10 = vcvt.s32.f32 %v1127_v6  ;;  %v1128_v15 = vcvt.s32.f32 %v1126_v11 }
0x19be   :  { %1130 = vmin.xlane.f32.xlu0 %v1129_v10 }
0x1a4b   :  { %v1131_v14 = vpop.xlane.xlu0 %1130 }
0x1a4c   :  { %vm1132_vm5 = vcmp.eq.f32.partialorder %v1129_v10, %v1131_v14  ;;  %v1137_v3 = vcvt.f32.s32 %v1131_v14 }
0x1a4d   :  { %v1133_v16 = vsel %vm1132_vm5, %v1128_v15, inf }
0x1a4e   :  { %1134 = vmin.xlane.f32.xlu0 %v1133_v16  ;;  %v1138_v18 = vshll.u32 %v1137_v3, 16 }
0x1adb   :  { %v1135_v17 = vpop.xlane.xlu0 %1134 }
0x1adc   :  { %v1136_v20 = vcvt.f32.s32 %v1135_v17 }
0x1ade   :  { %v1139_v21 = vadd.s32 %v1138_v18, %v1136_v20 }
0x1ae0   :  { %vm1140_vm6 = vcmp.eq.s32.totalorder %v2470_v39, %v1139_v21 }
0x1ae1   :  { %1856 = vmatmul.mubr.msk.f32.vlgmr.msra.gmra.mrb[10].mxu0 %vm1140_vm6, %v2317_v19 }
0x1ae2   :  { %2096 = vmatpush1.bf16.msra.mxu0 %v2430_v8  ;;  %1518 = vmatprep.mubr.f32.mxu0 %v2312_v7 }
0x1ae3   :  { %2098 = vmatprep.subr.bf16.mxu0 %v2432_v9 }
0x1ae6   :  { %2100 = vmatpush1.bf16.msra.mxu0 %v2437_v12 }
0x1bb4   :  { %v1209_v24 = vpop.f32.mrb[10].mxu0 }
0x1bb5   :  { %v1220_v25 = vsel %vm1219_vm7, %v1216_v23, %v1209_v24  ;;  %v1857_v26 = vpop.f32.mrb[11].mxu0 }
0x1bb6   :  { %v1221_v27 = vadd.f32 %v1220_v25, %v1114_v63 }
0x1bb8   :  { %2157 = vtanh.f32 %v1221_v27  ;;  %v1574_v8 = vmul.f32 -1.442695, %v1221_v27 }
0x1bba   :  { %2159 = vpow2.f32 %v1574_v8 }
0x1bc2   :  { %v2158_v28 = vpop.eup %2157 }
0x1bc3   :  { %1231 = vrot.lane.b32.xlu1 %v2158_v28, %s2313_s5 }
0x1bc4   :  { %v2160_v30 = vpop.eup %2159 }
0x1bc5   :  { %v1225_v9 = vadd.f32 1.0, %v2160_v30 }
0x1bc7   :  { %2161 = vrcp.f32 %v1225_v9 }
0x1bd1   :  { %v2162_v12 = vpop.eup %2161 }
0x1bd2   :  { %v1229_v33 = vmul.f32 %v2162_v12, %v2628_v55 }
0x1c35   :  { %v1232_v31 = vpop.permute.xlu1 %1231 }
0x1c36   :  { %v1234_v32 = vmul.f32 %v2162_v12, %v1232_v31 }
0x1c38   :  { %1236 = vrot.lane.b32.xlu0 %v1234_v32, %s2314_s16 }
0x1caa   :  { %v1237_v36 = vpop.permute.xlu0 %1236 }
0x1cab   :  { %v2663_v37 = vadd.f32 %v1237_v36, %v1229_v33 }
0x1cad   :  { %2163 = vtanh.f32 %v2663_v37 }
0x1cb7   :  { %v2164_v38 = vpop.eup %2163 }
0x1cb8   :  { %1242 = vrot.lane.b32.xlu1 %v2164_v38, %s2313_s5 }
0x1d2a   :  { %v1243_v35 = vpop.permute.xlu1 %1242 }
0x1d2b   :  { %v1245_v40 = vmul.f32 %v2162_v12, %v1243_v35 }
0x1d2d   :  { %1247 = vrot.lane.b32.xlu1 %v1245_v40, %s2314_s16 }
0x1d9f   :  { %v1248_v41 = vpop.permute.xlu1 %1247 }
0x1da0   :  { %1575 = vmatmul.mubr.msk.f32.vlgmr.msra.gmra.mrb[10].mxu1 %vm127_vm0, %v1248_v41 }
0x1da1   :  { %2071 = vmatpush3.bf16.msra.mxu1 %v2474_v48  ;;  %1890 = vmatprep.mubr.msk.f32.mxu1 %vm2316_vm3, %v2312_v7 }
0x1da2   :  { %2072 = vmatprep.subr.bf16.mxu1 %v2315_v47 }
0x1da5   :  { %2074 = vmatpush3.bf16.msra.mxu1 %v2478_v50 }
0x1da6   :  { %2075 = vmatprep.subr.bf16.mxu1 %v2315_v47 }
0x1da9   :  { %2077 = vmatpush3.bf16.msra.mxu1 %v2482_v53 }
0x1daa   :  { %2078 = vmatprep.subr.bf16.mxu1 %v2315_v47 }
0x1dad   :  { %2080 = vmatpush3.bf16.msra.mxu1 %v2486_v56 }
0x1dae   :  { %2081 = vmatprep.subr.bf16.mxu1 %v2315_v47 }
0x1db1   :  { %2083 = vmatpush3.bf16.msra.mxu1 %v2490_v59 }
0x1db2   :  { %2084 = vmatprep.subr.bf16.mxu1 %v2315_v47 }
0x1db5   :  { %2086 = vmatpush3.bf16.msra.mxu1 %v2494_v62 }
0x1db6   :  { %2087 = vmatprep.subr.bf16.mxu1 %v2315_v47 }
0x1db9   :  { %2089 = vmatpush3.bf16.msra.mxu1 %v2498_v1 }
0x1dba   :  { %2090 = vmatprep.subr.bf16.mxu1 %v2315_v47 }
0x1dbd   :  { %2092 = vmatpush3.bf16.msra.mxu1 %v2503_v13 }
0x1e73   :  { %v1317_v7 = vpop.f32.mrb[10].mxu1 }
0x1e74   :  { %v1319_v48 = vpop.f32.mrb[11].mxu1 }
0x1e75   :  { %v1322_v50 = vadd.f32 %v2465_v34, %v1319_v48 }
0x1e77   :  { %1324 = vst [vmem:[#allocation12 + $0x30] sm:$0xff] %v1322_v50  ;;  %1325 = vmax.xlane.f32.xlu0 %v1322_v50 }
0x1f04   :  { %v1326_v53 = vpop.xlane.xlu0 %1325 }
0x1f05   :  { %vm1327_vm3 = vcmp.eq.f32.partialorder %v1322_v50, %v1326_v53 }
0x1f06   :  { %v1328_v56 = vsel %vm1327_vm3, %v2470_v39, 128 }
0x1f07   :  { %v1330_v59 = vshra.s32 %v1328_v56, 16  ;;  %v1329_v42 = vand.u32 65535, %v1328_v56 }
0x1f09   :  { %v1332_v62 = vcvt.s32.f32 %v1330_v59  ;;  %v1331_v1 = vcvt.s32.f32 %v1329_v42 }
0x1f0b   :  { %1333 = vmin.xlane.f32.xlu1 %v1332_v62 }
0x1f98   :  { %v1334_v29 = vpop.xlane.xlu1 %1333 }
0x1f99   :  { %vm1335_vm8 = vcmp.eq.f32.partialorder %v1332_v62, %v1334_v29  ;;  %v1340_v13 = vcvt.f32.s32 %v1334_v29 }
0x1f9a   :  { %v1336_v47 = vsel %vm1335_vm8, %v1331_v1, inf }
0x1f9b   :  { %1337 = vmin.xlane.f32.xlu0 %v1336_v47  ;;  %v1341_v44 = vshll.u32 %v1340_v13, 16 }
0x2028   :  { %v1338_v43 = vpop.xlane.xlu0 %1337 }
0x2029   :  { %v1339_v45 = vcvt.f32.s32 %v1338_v43 }
0x202b   :  { %v1342_v46 = vadd.s32 %v1341_v44, %v1339_v45 }
0x202d   :  { %vm1343_vm9 = vcmp.eq.s32.totalorder %v2470_v39, %v1342_v46 }
0x202e   :  { %1891 = vmatmul.mubr.msk.f32.vlgmr.msra.gmra.mrb[12].mxu1 %vm1343_vm9, %v2317_v19 }
0x2101   :  { %v1412_v52 = vpop.f32.mrb[12].mxu1 }
0x2102   :  { %v1423_v54 = vsel %vm1422_vm10, %v1419_v51, %v1412_v52  ;;  %v1892_v55 = vpop.f32.mrb[13].mxu1 }
0x2103   :  { %v1424_v57 = vadd.f32 %v1423_v54, %v1317_v7 }
0x2105   :  { %2165 = vtanh.f32 %v1424_v57  ;;  %v1579_v60 = vmul.f32 -1.442695, %v1424_v57 }
0x2107   :  { %2167 = vpow2.f32 %v1579_v60 }
0x210f   :  { %v2166_v58 = vpop.eup %2165 }
0x2110   :  { %1434 = vrot.lane.b32.xlu0 %v2166_v58, %s2313_s5 }
0x2111   :  { %v2168_v61 = vpop.eup %2167 }
0x2112   :  { %v1428_v39 = vadd.f32 1.0, %v2168_v61 }
0x2114   :  { %2169 = vrcp.f32 %v1428_v39 }
0x211e   :  { %v2170_v19 = vpop.eup %2169 }
0x211f   :  { %v1432_v2 = vmul.f32 %v2170_v19, %v2663_v37 }
0x2182   :  { %v1435_v63 = vpop.permute.xlu0 %1434 }
0x2183   :  { %v1437_v0 = vmul.f32 %v2170_v19, %v1435_v63 }
0x2185   :  { %1439 = vrot.lane.b32.xlu1 %v1437_v0, %s2314_s16 }
0x21f7   :  { %v1440_v4 = vpop.permute.xlu1 %1439 }
0x21f8   :  { %v1442_v5 = vadd.f32 %v1440_v4, %v1432_v2 }
0x21fa   :  { %2171 = vtanh.f32 %v1442_v5 }
0x2204   :  { %v2172_v6 = vpop.eup %2171 }
0x2205   :  { %1445 = vrot.lane.b32.xlu1 %v2172_v6, %s2313_s5 }
0x2277   :  { %v1446_v10 = vpop.permute.xlu1 %1445 }
0x2278   :  { %v1448_v11 = vmul.f32 %v2170_v19, %v1446_v10 }
0x227a   :  { %1450 = vrot.lane.b32.xlu0 %v1448_v11, %s2314_s16 }
0x22ec   :  { %v1451_v14 = vpop.permute.xlu0 %1450 }
0x22ed   :  { %1580 = vmatmul.mubr.msk.f32.vlgmr.msra.gmra.mrb[12].mxu0 %vm127_vm0, %v1451_v14 }
0x23c0   :  { %v1520_v15 = vpop.f32.mrb[12].mxu0 }
0x23c1   :  { %v1521_v16 = vpop.f32.mrb[13].mxu0 }
0x23c2   :  { %v1524_v3 = vadd.f32 %v2465_v34, %v1521_v16 }
0x23c4   :  { %1526 = vst [vmem:[#allocation12 + $0x38] sm:$0xff] %v1524_v3 }
0x23c5   :  { %2282 = shalt.err (!%p2279_p3)
}
0x23c6   :  { %s2283_s9 = scalar_lea.hbm %s2719_s7, 1024 }
0x23c7   :  { %p2284_p4 = scmp.ne.s32.totalorder %s2719_s7, %s2283_s9  ;;  %p2287_p5 = scmp.lt.u32.totalorder %s2283_s9, %s2719_s7 }
0x23c9   :  { %p2289_p6 = pnand %p2287_p5, %p2284_p4 }
0x23cb   :  { %2292 = shalt.err (!%p2289_p6)
}
0x23cc   :  { %1538 = dma.vmem_to_hbm [thread:$0]  %s1533_s28, 1024, %s2719_s7, [#allocation4], %s2306_s0, %s2306_s0, %s2307_s10  }
0x23cd   :  { %2301 = dma.done.wait [#allocation4], 1024  }
0x23ce   :  { %2302 = vsyncadd [#allocation4], 4294966272 }
0x23cf   :  { %1542 = vsyncpa [#allocation3], 1 }
0x23d0   :  { %1543 = vsyncpa [#allocation8], 1 }
0x23d1   :  { %1544 = vsyncpa [#allocation11], 1 }
0x23d2   :  { %1545 = vsyncpa [#allocation4], 1 }
0x23d3   :  { %1546 = vsyncpa [#allocation5], 1 }

</bundles_post_ra>
